<compile_context>
chip_gen: v5e
topology: v5e:2x2
jax: 0.10.0
libtpu: 0.0.40
codegen_flags: <defaults>
</compile_context>

<pallas_src>
import functools

import jax
import jax.numpy as jnp
from jax.experimental import pallas as pl
from jax.experimental.pallas import tpu as pltpu

_LN_EPS = 1e-5  # torch.nn.LayerNorm default eps


# ---------------------------------------------------------------------------
# In-kernel math helpers (elementwise / reductions only — always lowerable)
# ---------------------------------------------------------------------------
def _layernorm(x, gamma, beta):
    """torch.nn.LayerNorm semantics: biased variance over last dim, eps=1e-5 (f32 math)."""
    mean = jnp.mean(x, axis=-1, keepdims=True)
    xc = x - mean
    var = jnp.mean(xc * xc, axis=-1, keepdims=True)
    return xc * jax.lax.rsqrt(var + _LN_EPS) * gamma + beta


def _erf_f32(x):
    # f32 erf rational approximation (mul/add/div/clamp only, lowers in Mosaic).
    # Kept (instead of tanh-GELU) to preserve exact nn.GELU() semantics; the VALU cost is
    # negligible at these FFN sizes.
    alpha = (0.00022905065861350646, 0.0034082910107109506, 0.050955695062380861,
             0.18520832239976145, 1.128379143519084)
    beta = (-1.1791602954361697e-7, 0.000023547966471313185, 0.0010179625278914885,
            0.014070470171167667, 0.11098505178285362, 0.49746925110067538, 1.0)
    lim = 3.832506856900711
    x = jnp.clip(x, -lim, lim)
    x2 = x * x
    p = jnp.zeros_like(x)
    for c in alpha:
        p = p * x2 + c
    q = jnp.zeros_like(x)
    for c in beta:
        q = q * x2 + c
    return x * p / q


def _gelu_exact(x):
    # nn.GELU() default (exact, erf based)
    return 0.5 * x * (1.0 + _erf_f32(x * 0.7071067811865476))


def _softmax_last(x):
    m = jnp.max(x, axis=-1, keepdims=True)
    e = jnp.exp(x - m)
    s = jnp.sum(e, axis=-1, keepdims=True)
    # approx reciprocal runs on the EUP slot (free); error ~1e-3 rel, well below bf16 matmul noise
    return e * pl.reciprocal(s, approx=True)


# ---------------------------------------------------------------------------
# Fused Pallas kernel: depth x (PreNorm-Attention + PreNorm-FFN) + final LayerNorm
# ---------------------------------------------------------------------------
def _transformer_kernel(x_ref,
                        ln1g_ref, ln1b_ref, wqkv_ref, wo_ref, bo_ref,
                        ln2g_ref, ln2b_ref, w1_ref, b1_ref, w2_ref, b2_ref,
                        ng_ref, nb_ref,
                        o_ref, *,
                        depth, heads, dim_head, scale, batch_tile, use_bf16):
    M, D = x_ref.shape                     # M = batch_tile * N tokens (lane-flattened rows)
    N = M // batch_tile
    inner = heads * dim_head

    def mm(a, b):                          # MXU matmul, bf16 inputs / f32 accumulation
        if use_bf16:
            a = a.astype(jnp.bfloat16)
            b = b.astype(jnp.bfloat16)
        return jnp.dot(a, b, preferred_element_type=jnp.float32)

    def bmm(spec, a, b):                   # batched MXU contraction (batch over batch_tile)
        if use_bf16:
            a = a.astype(jnp.bfloat16)
            b = b.astype(jnp.bfloat16)
        return jnp.einsum(spec, a, b, preferred_element_type=jnp.float32)

    x = x_ref[...]                         # (M, D) f32

    for l in range(depth):                 # static unroll over layers; weights stay VMEM-resident
        # ---- PreNorm + multi-head self-attention --------------------------
        xn = _layernorm(x, ln1g_ref[l], ln1b_ref[l])
        qkv = mm(xn, wqkv_ref[l])                                   # (M, 3*inner)
        q = qkv[:, :inner] * scale          # fold softmax scale into q (cheaper than scaling NxN)
        k = qkv[:, inner:2 * inner]
        v = qkv[:, 2 * inner:]
        q3 = q.reshape(batch_tile, N, inner)
        k3 = k.reshape(batch_tile, N, inner)
        v3 = v.reshape(batch_tile, N, inner)

        wo_l = wo_ref[l]                    # (inner, D)
        attn_out = bo_ref[l]                # (1, D) bias, broadcasts over rows
        for h in range(heads):              # small static unroll; no concat of head outputs
            sl = slice(h * dim_head, (h + 1) * dim_head)
            dots = bmm('bqd,bkd->bqk', q3[:, :, sl], k3[:, :, sl])  # (Bt, N, N)
            attn = _softmax_last(dots)
            oh = bmm('bqk,bkd->bqd', attn, v3[:, :, sl])            # (Bt, N, dh)
            attn_out = attn_out + mm(oh.reshape(M, dim_head), wo_l[sl, :])
        x = x + attn_out

        # ---- PreNorm + FeedForward (Linear -> GELU -> Linear) -------------
        xn2 = _layernorm(x, ln2g_ref[l], ln2b_ref[l])
        h1 = mm(xn2, w1_ref[l]) + b1_ref[l]
        h1 = _gelu_exact(h1)
        x = x + mm(h1, w2_ref[l]) + b2_ref[l]

    # ---- final LayerNorm --------------------------------------------------
    o_ref[...] = _layernorm(x, ng_ref[...], nb_ref[...])


# ---------------------------------------------------------------------------
# JAX-side wrapper (parameter plumbing + single pallas_call)
# ---------------------------------------------------------------------------
_WEIGHT_ORDER = ("ln1_g", "ln1_b", "w_qkv", "w_out", "b_out",
                 "ln2_g", "ln2_b", "w1", "b1", "w2", "b2",
                 "norm_g", "norm_b")
_MATMUL_WEIGHTS = ("w_qkv", "w_out", "w1", "w2")


def transformer_forward(x, params, *, heads, dim_head, use_bf16=True):
    """x: (B, N, D) f32. params: dict of depth-stacked weight arrays (see init_params)."""
    B, N, D = x.shape
    depth = params["w_qkv"].shape[0]

    # Batch enough rows per grid step to fill MXU rows (target >= 256) while dividing B.
    batch_tile = min(B, max(1, -(-256 // N)))
    while B % batch_tile:
        batch_tile -= 1
    m_tile = batch_tile * N                 # rows per grid step (= full B*N at demo sizes)

    weights = []
    for name in _WEIGHT_ORDER:
        w = params[name]
        if use_bf16 and name in _MATMUL_WEIGHTS:
            w = w.astype(jnp.bfloat16)      # halves weight DMA; matmul accumulates in f32
        weights.append(w)

    kernel = functools.partial(
        _transformer_kernel,
        depth=depth, heads=heads, dim_head=dim_head,
        scale=float(dim_head) ** -0.5,
        batch_tile=batch_tile, use_bf16=use_bf16)

    x2 = x.reshape(B * N, D)                # lane-flattened token slab
    in_specs = [pl.BlockSpec((m_tile, D), lambda i: (i, 0))]
    # Weights: full arrays, constant index_map (fetched once per grid step; tiny here).
    in_specs += [pl.BlockSpec(w.shape, lambda i, n=w.ndim: (0,) * n) for w in weights]

    out = pl.pallas_call(
        kernel,
        out_shape=jax.ShapeDtypeStruct((B * N, D), jnp.float32),
        grid=(B * N // m_tile,),
        in_specs=in_specs,
        out_specs=pl.BlockSpec((m_tile, D), lambda i: (i, 0)),
        compiler_params=pltpu.CompilerParams(dimension_semantics=("parallel",)),
    )(x2, *weights)
    return out.reshape(B, N, D)


# ---------------------------------------------------------------------------
# Pure-JAX reference (for in-script validation) and parameter init
# ---------------------------------------------------------------------------
def _reference_forward(x, params, *, heads, dim_head):
    B, N, D = x.shape
    depth = params["w_qkv"].shape[0]
    scale = float(dim_head) ** -0.5

    def ln(v, g, b):
        m = v.mean(-1, keepdims=True)
        c = v - m
        return c * jax.lax.rsqrt((c * c).mean(-1, keepdims=True) + _LN_EPS) * g + b

    for l in range(depth):
        xn = ln(x, params["ln1_g"][l], params["ln1_b"][l])
        qkv = xn @ params["w_qkv"][l]
        q, k, v = jnp.split(qkv, 3, axis=-1)
        q = q.reshape(B, N, heads, dim_head).transpose(0, 2, 1, 3)
        k = k.reshape(B, N, heads, dim_head).transpose(0, 2, 1, 3)
        v = v.reshape(B, N, heads, dim_head).transpose(0, 2, 1, 3)
        dots = jnp.einsum('bhqd,bhkd->bhqk', q, k) * scale
        attn = jax.nn.softmax(dots, axis=-1)
        o = jnp.einsum('bhqk,bhkd->bhqd', attn, v)
        o = o.transpose(0, 2, 1, 3).reshape(B, N, heads * dim_head)
        x = x + o @ params["w_out"][l] + params["b_out"][l]
        xn2 = ln(x, params["ln2_g"][l], params["ln2_b"][l])
        h1 = jax.nn.gelu(xn2 @ params["w1"][l] + params["b1"][l], approximate=False)
        x = x + h1 @ params["w2"][l] + params["b2"][l]
    return ln(x, params["norm_g"], params["norm_b"])


def init_params(key, dim, depth, heads, dim_head, mlp_dim):
    inner = heads * dim_head
    k = jax.random.split(key, 7 * depth).reshape(depth, 7, 2)
    rnd = lambda kk, shape: 0.02 * jax.random.normal(kk, shape, jnp.float32)
    return dict(
        ln1_g=jnp.ones((depth, 1, dim), jnp.float32),
        ln1_b=jnp.zeros((depth, 1, dim), jnp.float32),
        w_qkv=jnp.stack([rnd(k[l, 0], (dim, 3 * inner)) for l in range(depth)]),
        w_out=jnp.stack([rnd(k[l, 1], (inner, dim)) for l in range(depth)]),
        b_out=jnp.stack([rnd(k[l, 2], (1, dim)) for l in range(depth)]),
        ln2_g=jnp.ones((depth, 1, dim), jnp.float32),
        ln2_b=jnp.zeros((depth, 1, dim), jnp.float32),
        w1=jnp.stack([rnd(k[l, 3], (dim, mlp_dim)) for l in range(depth)]),
        b1=jnp.stack([rnd(k[l, 4], (1, mlp_dim)) for l in range(depth)]),
        w2=jnp.stack([rnd(k[l, 5], (mlp_dim, dim)) for l in range(depth)]),
        b2=jnp.stack([rnd(k[l, 6], (1, dim)) for l in range(depth)]),
        norm_g=jnp.ones((1, dim), jnp.float32),
        norm_b=jnp.zeros((1, dim), jnp.float32),
    )


if __name__ == "__main__":
    # Small shapes consistent with Transformer(dim=32, depth=2, heads=2, dim_head=16, mlp_dim=64)
    DIM, DEPTH, HEADS, DIM_HEAD, MLP_DIM = 32, 2, 2, 16, 64
    B, N = 2, 8

    key = jax.random.PRNGKey(0)
    kx, kp = jax.random.split(key)
    x = jax.random.normal(kx, (B, N, DIM), jnp.float32)
    params = init_params(kp, DIM, DEPTH, HEADS, DIM_HEAD, MLP_DIM)

    out = transformer_forward(x, params, heads=HEADS, dim_head=DIM_HEAD, use_bf16=True)
    out = jax.block_until_ready(out)
    assert out.shape == (B, N, DIM) and out.dtype == jnp.float32
    assert bool(jnp.all(jnp.isfinite(out)))

    ref = _reference_forward(x, params, heads=HEADS, dim_head=DIM_HEAD)
    max_err = float(jnp.max(jnp.abs(out - ref)))
    assert max_err < 5e-2, f"mismatch vs reference: {max_err}"

    print("KERNEL_OK")
</pallas_src>

<mosaic_0001>
module attributes {stable_mosaic.version = 11 : i64} {
  func.func @_transformer_kernel(%arg0: i32, %arg1: memref<16x32xf32, #tpu.memory_space<vmem>>, %arg2: memref<2x1x32xf32, #tpu.memory_space<vmem>>, %arg3: memref<2x1x32xf32, #tpu.memory_space<vmem>>, %arg4: memref<2x32x96xbf16, #tpu.memory_space<vmem>>, %arg5: memref<2x32x32xbf16, #tpu.memory_space<vmem>>, %arg6: memref<2x1x32xf32, #tpu.memory_space<vmem>>, %arg7: memref<2x1x32xf32, #tpu.memory_space<vmem>>, %arg8: memref<2x1x32xf32, #tpu.memory_space<vmem>>, %arg9: memref<2x32x64xbf16, #tpu.memory_space<vmem>>, %arg10: memref<2x1x64xf32, #tpu.memory_space<vmem>>, %arg11: memref<2x64x32xbf16, #tpu.memory_space<vmem>>, %arg12: memref<2x1x32xf32, #tpu.memory_space<vmem>>, %arg13: memref<1x32xf32, #tpu.memory_space<vmem>>, %arg14: memref<1x32xf32, #tpu.memory_space<vmem>>, %arg15: memref<16x32xf32, #tpu.memory_space<vmem>>) attributes {dimension_semantics = [#tpu.dimension_semantics<parallel>], iteration_bounds = array<i64: 1>, scalar_prefetch = 0 : i64, scratch_operands = 0 : i64, tpu.core_type = #tpu.core_type<tc>, window_params = [{transform_indices = @transform_0, window_bounds = array<i64: 16, 32>}, {pipeline_mode = #tpu.pipeline_mode<synchronous>, transform_indices = @transform_1, window_bounds = array<i64: 2, 1, 32>}, {pipeline_mode = #tpu.pipeline_mode<synchronous>, transform_indices = @transform_2, window_bounds = array<i64: 2, 1, 32>}, {pipeline_mode = #tpu.pipeline_mode<synchronous>, transform_indices = @transform_3, window_bounds = array<i64: 2, 32, 96>}, {pipeline_mode = #tpu.pipeline_mode<synchronous>, transform_indices = @transform_4, window_bounds = array<i64: 2, 32, 32>}, {pipeline_mode = #tpu.pipeline_mode<synchronous>, transform_indices = @transform_5, window_bounds = array<i64: 2, 1, 32>}, {pipeline_mode = #tpu.pipeline_mode<synchronous>, transform_indices = @transform_6, window_bounds = array<i64: 2, 1, 32>}, {pipeline_mode = #tpu.pipeline_mode<synchronous>, transform_indices = @transform_7, window_bounds = array<i64: 2, 1, 32>}, {pipeline_mode = #tpu.pipeline_mode<synchronous>, transform_indices = @transform_8, window_bounds = array<i64: 2, 32, 64>}, {pipeline_mode = #tpu.pipeline_mode<synchronous>, transform_indices = @transform_9, window_bounds = array<i64: 2, 1, 64>}, {pipeline_mode = #tpu.pipeline_mode<synchronous>, transform_indices = @transform_10, window_bounds = array<i64: 2, 64, 32>}, {pipeline_mode = #tpu.pipeline_mode<synchronous>, transform_indices = @transform_11, window_bounds = array<i64: 2, 1, 32>}, {pipeline_mode = #tpu.pipeline_mode<synchronous>, transform_indices = @transform_12, window_bounds = array<i64: 1, 32>}, {pipeline_mode = #tpu.pipeline_mode<synchronous>, transform_indices = @transform_13, window_bounds = array<i64: 1, 32>}, {transform_indices = @transform_14, window_bounds = array<i64: 16, 32>}]} {
    %c0 = arith.constant 0 : index
    %c0_0 = arith.constant 0 : index
    %0 = vector.load %arg1[%c0, %c0_0] : memref<16x32xf32, #tpu.memory_space<vmem>>, vector<16x32xf32>
    %c0_1 = arith.constant 0 : index
    %c0_2 = arith.constant 0 : index
    %c0_3 = arith.constant 0 : index
    %1 = vector.load %arg2[%c0_1, %c0_2, %c0_3] : memref<2x1x32xf32, #tpu.memory_space<vmem>>, vector<1x1x32xf32>
    %2 = vector.shape_cast %1 : vector<1x1x32xf32> to vector<1x32xf32>
    %c0_4 = arith.constant 0 : index
    %c0_5 = arith.constant 0 : index
    %c0_6 = arith.constant 0 : index
    %3 = vector.load %arg3[%c0_4, %c0_5, %c0_6] : memref<2x1x32xf32, #tpu.memory_space<vmem>>, vector<1x1x32xf32>
    %4 = vector.shape_cast %3 : vector<1x1x32xf32> to vector<1x32xf32>
    %cst = arith.constant dense<0.000000e+00> : vector<16xf32>
    %5 = vector.multi_reduction <add>, %0, %cst [1] : vector<16x32xf32> to vector<16xf32>
    %6 = vector.shape_cast %5 : vector<16xf32> to vector<16x1xf32>
    %cst_7 = arith.constant 3.200000e+01 : f32
    %7 = vector.broadcast %cst_7 : f32 to vector<16x1xf32>
    %8 = arith.divf %6, %7 : vector<16x1xf32>
    %9 = vector.broadcast %8 : vector<16x1xf32> to vector<16x32xf32>
    %10 = arith.subf %0, %9 : vector<16x32xf32>
    %11 = arith.mulf %10, %10 : vector<16x32xf32>
    %cst_8 = arith.constant dense<0.000000e+00> : vector<16xf32>
    %12 = vector.multi_reduction <add>, %11, %cst_8 [1] : vector<16x32xf32> to vector<16xf32>
    %13 = vector.shape_cast %12 : vector<16xf32> to vector<16x1xf32>
    %cst_9 = arith.constant 3.200000e+01 : f32
    %14 = vector.broadcast %cst_9 : f32 to vector<16x1xf32>
    %15 = arith.divf %13, %14 : vector<16x1xf32>
    %cst_10 = arith.constant 9.99999974E-6 : f32
    %16 = vector.broadcast %cst_10 : f32 to vector<16x1xf32>
    %17 = arith.addf %15, %16 : vector<16x1xf32>
    %18 = math.rsqrt %17 : vector<16x1xf32>
    %19 = vector.broadcast %18 : vector<16x1xf32> to vector<16x32xf32>
    %20 = arith.mulf %10, %19 : vector<16x32xf32>
    %21 = vector.broadcast %2 : vector<1x32xf32> to vector<16x32xf32>
    %22 = arith.mulf %20, %21 : vector<16x32xf32>
    %23 = vector.broadcast %4 : vector<1x32xf32> to vector<16x32xf32>
    %24 = arith.addf %22, %23 : vector<16x32xf32>
    %c0_11 = arith.constant 0 : index
    %c0_12 = arith.constant 0 : index
    %c0_13 = arith.constant 0 : index
    %25 = vector.load %arg4[%c0_11, %c0_12, %c0_13] : memref<2x32x96xbf16, #tpu.memory_space<vmem>>, vector<1x32x96xbf16>
    %26 = vector.shape_cast %25 : vector<1x32x96xbf16> to vector<32x96xbf16>
    %27 = arith.truncf %24 : vector<16x32xf32> to vector<16x32xbf16>
    %cst_14 = arith.constant dense<0.000000e+00> : vector<16x96xf32>
    %28 = tpu.matmul %27, %26, %cst_14 {dimension_numbers = #tpu.dot_dimension_numbers<[1], [0], [0], [1], [0, 0, 1, 1], [], []>} : vector<16x32xbf16>, vector<32x96xbf16>, vector<16x96xf32> -> vector<16x96xf32>
    %29 = vector.extract_strided_slice %28 {offsets = [0, 0], sizes = [16, 32], strides = [1, 1]} : vector<16x96xf32> to vector<16x32xf32>
    %cst_15 = arith.constant 2.500000e-01 : f32
    %30 = vector.broadcast %cst_15 : f32 to vector<16x32xf32>
    %31 = arith.mulf %29, %30 : vector<16x32xf32>
    %32 = vector.extract_strided_slice %28 {offsets = [0, 32], sizes = [16, 32], strides = [1, 1]} : vector<16x96xf32> to vector<16x32xf32>
    %33 = vector.extract_strided_slice %28 {offsets = [0, 64], sizes = [16, 32], strides = [1, 1]} : vector<16x96xf32> to vector<16x32xf32>
    %34 = vector.shape_cast %31 : vector<16x32xf32> to vector<2x8x32xf32>
    %35 = vector.shape_cast %32 : vector<16x32xf32> to vector<2x8x32xf32>
    %36 = vector.shape_cast %33 : vector<16x32xf32> to vector<2x8x32xf32>
    %c0_16 = arith.constant 0 : index
    %c0_17 = arith.constant 0 : index
    %c0_18 = arith.constant 0 : index
    %37 = vector.load %arg5[%c0_16, %c0_17, %c0_18] : memref<2x32x32xbf16, #tpu.memory_space<vmem>>, vector<1x32x32xbf16>
    %38 = vector.shape_cast %37 : vector<1x32x32xbf16> to vector<32x32xbf16>
    %c0_19 = arith.constant 0 : index
    %c0_20 = arith.constant 0 : index
    %c0_21 = arith.constant 0 : index
    %39 = vector.load %arg6[%c0_19, %c0_20, %c0_21] : memref<2x1x32xf32, #tpu.memory_space<vmem>>, vector<1x1x32xf32>
    %40 = vector.shape_cast %39 : vector<1x1x32xf32> to vector<1x32xf32>
    %41 = vector.extract_strided_slice %34 {offsets = [0, 0, 0], sizes = [2, 8, 16], strides = [1, 1, 1]} : vector<2x8x32xf32> to vector<2x8x16xf32>
    %42 = vector.extract_strided_slice %35 {offsets = [0, 0, 0], sizes = [2, 8, 16], strides = [1, 1, 1]} : vector<2x8x32xf32> to vector<2x8x16xf32>
    %43 = arith.truncf %41 : vector<2x8x16xf32> to vector<2x8x16xbf16>
    %44 = arith.truncf %42 : vector<2x8x16xf32> to vector<2x8x16xbf16>
    "tpu.trace_start"() <{level = 10 : i32, message = "bqd,bkd->bqk"}> : () -> ()
    %cst_22 = arith.constant dense<0.000000e+00> : vector<2x8x8xf32>
    %45 = tpu.matmul %43, %44, %cst_22 {dimension_numbers = #tpu.dot_dimension_numbers<[2], [2], [1], [1], [0, 0, 0, 1, 1, 1], [0], [0]>} : vector<2x8x16xbf16>, vector<2x8x16xbf16>, vector<2x8x8xf32> -> vector<2x8x8xf32>
    "tpu.trace_stop"() : () -> ()
    %cst_23 = arith.constant dense<0xFF800000> : vector<2x8xf32>
    %46 = vector.multi_reduction <maximumf>, %45, %cst_23 [2] : vector<2x8x8xf32> to vector<2x8xf32>
    %47 = vector.shape_cast %46 : vector<2x8xf32> to vector<2x8x1xf32>
    %48 = vector.broadcast %47 : vector<2x8x1xf32> to vector<2x8x8xf32>
    %49 = arith.subf %45, %48 : vector<2x8x8xf32>
    %50 = math.exp %49 : vector<2x8x8xf32>
    %cst_24 = arith.constant dense<0.000000e+00> : vector<2x8xf32>
    %51 = vector.multi_reduction <add>, %50, %cst_24 [2] : vector<2x8x8xf32> to vector<2x8xf32>
    %52 = vector.shape_cast %51 : vector<2x8xf32> to vector<2x8x1xf32>
    %53 = tpu.reciprocal %52 {approx = true} : vector<2x8x1xf32> -> vector<2x8x1xf32>
    %54 = vector.broadcast %53 : vector<2x8x1xf32> to vector<2x8x8xf32>
    %55 = arith.mulf %50, %54 : vector<2x8x8xf32>
    %56 = vector.extract_strided_slice %36 {offsets = [0, 0, 0], sizes = [2, 8, 16], strides = [1, 1, 1]} : vector<2x8x32xf32> to vector<2x8x16xf32>
    %57 = arith.truncf %55 : vector<2x8x8xf32> to vector<2x8x8xbf16>
    %58 = arith.truncf %56 : vector<2x8x16xf32> to vector<2x8x16xbf16>
    "tpu.trace_start"() <{level = 10 : i32, message = "bqk,bkd->bqd"}> : () -> ()
    %cst_25 = arith.constant dense<0.000000e+00> : vector<2x8x16xf32>
    %59 = tpu.matmul %57, %58, %cst_25 {dimension_numbers = #tpu.dot_dimension_numbers<[2], [1], [1], [2], [0, 0, 0, 1, 1, 2], [0], [0]>} : vector<2x8x8xbf16>, vector<2x8x16xbf16>, vector<2x8x16xf32> -> vector<2x8x16xf32>
    "tpu.trace_stop"() : () -> ()
    %60 = vector.shape_cast %59 : vector<2x8x16xf32> to vector<16x16xf32>
    %61 = vector.extract_strided_slice %38 {offsets = [0, 0], sizes = [16, 32], strides = [1, 1]} : vector<32x32xbf16> to vector<16x32xbf16>
    %62 = arith.truncf %60 : vector<16x16xf32> to vector<16x16xbf16>
    %cst_26 = arith.constant dense<0.000000e+00> : vector<16x32xf32>
    %63 = tpu.matmul %62, %61, %cst_26 {dimension_numbers = #tpu.dot_dimension_numbers<[1], [0], [0], [1], [0, 0, 1, 1], [], []>} : vector<16x16xbf16>, vector<16x32xbf16>, vector<16x32xf32> -> vector<16x32xf32>
    %64 = vector.broadcast %40 : vector<1x32xf32> to vector<16x32xf32>
    %65 = arith.addf %64, %63 : vector<16x32xf32>
    %66 = vector.extract_strided_slice %34 {offsets = [0, 0, 16], sizes = [2, 8, 16], strides = [1, 1, 1]} : vector<2x8x32xf32> to vector<2x8x16xf32>
    %67 = vector.extract_strided_slice %35 {offsets = [0, 0, 16], sizes = [2, 8, 16], strides = [1, 1, 1]} : vector<2x8x32xf32> to vector<2x8x16xf32>
    %68 = arith.truncf %66 : vector<2x8x16xf32> to vector<2x8x16xbf16>
    %69 = arith.truncf %67 : vector<2x8x16xf32> to vector<2x8x16xbf16>
    "tpu.trace_start"() <{level = 10 : i32, message = "bqd,bkd->bqk"}> : () -> ()
    %cst_27 = arith.constant dense<0.000000e+00> : vector<2x8x8xf32>
    %70 = tpu.matmul %68, %69, %cst_27 {dimension_numbers = #tpu.dot_dimension_numbers<[2], [2], [1], [1], [0, 0, 0, 1, 1, 1], [0], [0]>} : vector<2x8x16xbf16>, vector<2x8x16xbf16>, vector<2x8x8xf32> -> vector<2x8x8xf32>
    "tpu.trace_stop"() : () -> ()
    %cst_28 = arith.constant dense<0xFF800000> : vector<2x8xf32>
    %71 = vector.multi_reduction <maximumf>, %70, %cst_28 [2] : vector<2x8x8xf32> to vector<2x8xf32>
    %72 = vector.shape_cast %71 : vector<2x8xf32> to vector<2x8x1xf32>
    %73 = vector.broadcast %72 : vector<2x8x1xf32> to vector<2x8x8xf32>
    %74 = arith.subf %70, %73 : vector<2x8x8xf32>
    %75 = math.exp %74 : vector<2x8x8xf32>
    %cst_29 = arith.constant dense<0.000000e+00> : vector<2x8xf32>
    %76 = vector.multi_reduction <add>, %75, %cst_29 [2] : vector<2x8x8xf32> to vector<2x8xf32>
    %77 = vector.shape_cast %76 : vector<2x8xf32> to vector<2x8x1xf32>
    %78 = tpu.reciprocal %77 {approx = true} : vector<2x8x1xf32> -> vector<2x8x1xf32>
    %79 = vector.broadcast %78 : vector<2x8x1xf32> to vector<2x8x8xf32>
    %80 = arith.mulf %75, %79 : vector<2x8x8xf32>
    %81 = vector.extract_strided_slice %36 {offsets = [0, 0, 16], sizes = [2, 8, 16], strides = [1, 1, 1]} : vector<2x8x32xf32> to vector<2x8x16xf32>
    %82 = arith.truncf %80 : vector<2x8x8xf32> to vector<2x8x8xbf16>
    %83 = arith.truncf %81 : vector<2x8x16xf32> to vector<2x8x16xbf16>
    "tpu.trace_start"() <{level = 10 : i32, message = "bqk,bkd->bqd"}> : () -> ()
    %cst_30 = arith.constant dense<0.000000e+00> : vector<2x8x16xf32>
    %84 = tpu.matmul %82, %83, %cst_30 {dimension_numbers = #tpu.dot_dimension_numbers<[2], [1], [1], [2], [0, 0, 0, 1, 1, 2], [0], [0]>} : vector<2x8x8xbf16>, vector<2x8x16xbf16>, vector<2x8x16xf32> -> vector<2x8x16xf32>
    "tpu.trace_stop"() : () -> ()
    %85 = vector.shape_cast %84 : vector<2x8x16xf32> to vector<16x16xf32>
    %86 = vector.extract_strided_slice %38 {offsets = [16, 0], sizes = [16, 32], strides = [1, 1]} : vector<32x32xbf16> to vector<16x32xbf16>
    %87 = arith.truncf %85 : vector<16x16xf32> to vector<16x16xbf16>
    %cst_31 = arith.constant dense<0.000000e+00> : vector<16x32xf32>
    %88 = tpu.matmul %87, %86, %cst_31 {dimension_numbers = #tpu.dot_dimension_numbers<[1], [0], [0], [1], [0, 0, 1, 1], [], []>} : vector<16x16xbf16>, vector<16x32xbf16>, vector<16x32xf32> -> vector<16x32xf32>
    %89 = arith.addf %65, %88 : vector<16x32xf32>
    %90 = arith.addf %0, %89 : vector<16x32xf32>
    %c0_32 = arith.constant 0 : index
    %c0_33 = arith.constant 0 : index
    %c0_34 = arith.constant 0 : index
    %91 = vector.load %arg7[%c0_32, %c0_33, %c0_34] : memref<2x1x32xf32, #tpu.memory_space<vmem>>, vector<1x1x32xf32>
    %92 = vector.shape_cast %91 : vector<1x1x32xf32> to vector<1x32xf32>
    %c0_35 = arith.constant 0 : index
    %c0_36 = arith.constant 0 : index
    %c0_37 = arith.constant 0 : index
    %93 = vector.load %arg8[%c0_35, %c0_36, %c0_37] : memref<2x1x32xf32, #tpu.memory_space<vmem>>, vector<1x1x32xf32>
    %94 = vector.shape_cast %93 : vector<1x1x32xf32> to vector<1x32xf32>
    %cst_38 = arith.constant dense<0.000000e+00> : vector<16xf32>
    %95 = vector.multi_reduction <add>, %90, %cst_38 [1] : vector<16x32xf32> to vector<16xf32>
    %96 = vector.shape_cast %95 : vector<16xf32> to vector<16x1xf32>
    %cst_39 = arith.constant 3.200000e+01 : f32
    %97 = vector.broadcast %cst_39 : f32 to vector<16x1xf32>
    %98 = arith.divf %96, %97 : vector<16x1xf32>
    %99 = vector.broadcast %98 : vector<16x1xf32> to vector<16x32xf32>
    %100 = arith.subf %90, %99 : vector<16x32xf32>
    %101 = arith.mulf %100, %100 : vector<16x32xf32>
    %cst_40 = arith.constant dense<0.000000e+00> : vector<16xf32>
    %102 = vector.multi_reduction <add>, %101, %cst_40 [1] : vector<16x32xf32> to vector<16xf32>
    %103 = vector.shape_cast %102 : vector<16xf32> to vector<16x1xf32>
    %cst_41 = arith.constant 3.200000e+01 : f32
    %104 = vector.broadcast %cst_41 : f32 to vector<16x1xf32>
    %105 = arith.divf %103, %104 : vector<16x1xf32>
    %cst_42 = arith.constant 9.99999974E-6 : f32
    %106 = vector.broadcast %cst_42 : f32 to vector<16x1xf32>
    %107 = arith.addf %105, %106 : vector<16x1xf32>
    %108 = math.rsqrt %107 : vector<16x1xf32>
    %109 = vector.broadcast %108 : vector<16x1xf32> to vector<16x32xf32>
    %110 = arith.mulf %100, %109 : vector<16x32xf32>
    %111 = vector.broadcast %92 : vector<1x32xf32> to vector<16x32xf32>
    %112 = arith.mulf %110, %111 : vector<16x32xf32>
    %113 = vector.broadcast %94 : vector<1x32xf32> to vector<16x32xf32>
    %114 = arith.addf %112, %113 : vector<16x32xf32>
    %c0_43 = arith.constant 0 : index
    %c0_44 = arith.constant 0 : index
    %c0_45 = arith.constant 0 : index
    %115 = vector.load %arg9[%c0_43, %c0_44, %c0_45] : memref<2x32x64xbf16, #tpu.memory_space<vmem>>, vector<1x32x64xbf16>
    %116 = vector.shape_cast %115 : vector<1x32x64xbf16> to vector<32x64xbf16>
    %117 = arith.truncf %114 : vector<16x32xf32> to vector<16x32xbf16>
    %cst_46 = arith.constant dense<0.000000e+00> : vector<16x64xf32>
    %118 = tpu.matmul %117, %116, %cst_46 {dimension_numbers = #tpu.dot_dimension_numbers<[1], [0], [0], [1], [0, 0, 1, 1], [], []>} : vector<16x32xbf16>, vector<32x64xbf16>, vector<16x64xf32> -> vector<16x64xf32>
    %c0_47 = arith.constant 0 : index
    %c0_48 = arith.constant 0 : index
    %c0_49 = arith.constant 0 : index
    %119 = vector.load %arg10[%c0_47, %c0_48, %c0_49] : memref<2x1x64xf32, #tpu.memory_space<vmem>>, vector<1x1x64xf32>
    %120 = vector.shape_cast %119 : vector<1x1x64xf32> to vector<1x64xf32>
    %121 = vector.broadcast %120 : vector<1x64xf32> to vector<16x64xf32>
    %122 = arith.addf %118, %121 : vector<16x64xf32>
    %cst_50 = arith.constant 5.000000e-01 : f32
    %123 = vector.broadcast %cst_50 : f32 to vector<16x64xf32>
    %124 = arith.mulf %123, %122 : vector<16x64xf32>
    %cst_51 = arith.constant 0.707106769 : f32
    %125 = vector.broadcast %cst_51 : f32 to vector<16x64xf32>
    %126 = arith.mulf %122, %125 : vector<16x64xf32>
    %cst_52 = arith.constant -3.8325069 : f32
    %cst_53 = arith.constant 3.8325069 : f32
    %127 = vector.broadcast %cst_52 : f32 to vector<16x64xf32>
    %128 = arith.maximumf %127, %126 : vector<16x64xf32>
    %129 = vector.broadcast %cst_53 : f32 to vector<16x64xf32>
    %130 = arith.minimumf %129, %128 : vector<16x64xf32>
    %131 = arith.mulf %130, %130 : vector<16x64xf32>
    %cst_54 = arith.constant 0.000000e+00 : f32
    %132 = vector.broadcast %cst_54 : f32 to vector<16x64xf32>
    %133 = arith.mulf %132, %131 : vector<16x64xf32>
    %cst_55 = arith.constant 2.29050653E-4 : f32
    %134 = vector.broadcast %cst_55 : f32 to vector<16x64xf32>
    %135 = arith.addf %133, %134 : vector<16x64xf32>
    %136 = arith.mulf %135, %131 : vector<16x64xf32>
    %cst_56 = arith.constant 0.00340829091 : f32
    %137 = vector.broadcast %cst_56 : f32 to vector<16x64xf32>
    %138 = arith.addf %136, %137 : vector<16x64xf32>
    %139 = arith.mulf %138, %131 : vector<16x64xf32>
    %cst_57 = arith.constant 0.0509556942 : f32
    %140 = vector.broadcast %cst_57 : f32 to vector<16x64xf32>
    %141 = arith.addf %139, %140 : vector<16x64xf32>
    %142 = arith.mulf %141, %131 : vector<16x64xf32>
    %cst_58 = arith.constant 0.185208321 : f32
    %143 = vector.broadcast %cst_58 : f32 to vector<16x64xf32>
    %144 = arith.addf %142, %143 : vector<16x64xf32>
    %145 = arith.mulf %144, %131 : vector<16x64xf32>
    %cst_59 = arith.constant 1.12837911 : f32
    %146 = vector.broadcast %cst_59 : f32 to vector<16x64xf32>
    %147 = arith.addf %145, %146 : vector<16x64xf32>
    %cst_60 = arith.constant 0.000000e+00 : f32
    %148 = vector.broadcast %cst_60 : f32 to vector<16x64xf32>
    %149 = arith.mulf %148, %131 : vector<16x64xf32>
    %cst_61 = arith.constant -1.17916031E-7 : f32
    %150 = vector.broadcast %cst_61 : f32 to vector<16x64xf32>
    %151 = arith.addf %149, %150 : vector<16x64xf32>
    %152 = arith.mulf %151, %131 : vector<16x64xf32>
    %cst_62 = arith.constant 2.35479656E-5 : f32
    %153 = vector.broadcast %cst_62 : f32 to vector<16x64xf32>
    %154 = arith.addf %152, %153 : vector<16x64xf32>
    %155 = arith.mulf %154, %131 : vector<16x64xf32>
    %cst_63 = arith.constant 0.00101796258 : f32
    %156 = vector.broadcast %cst_63 : f32 to vector<16x64xf32>
    %157 = arith.addf %155, %156 : vector<16x64xf32>
    %158 = arith.mulf %157, %131 : vector<16x64xf32>
    %cst_64 = arith.constant 0.0140704699 : f32
    %159 = vector.broadcast %cst_64 : f32 to vector<16x64xf32>
    %160 = arith.addf %158, %159 : vector<16x64xf32>
    %161 = arith.mulf %160, %131 : vector<16x64xf32>
    %cst_65 = arith.constant 0.110985048 : f32
    %162 = vector.broadcast %cst_65 : f32 to vector<16x64xf32>
    %163 = arith.addf %161, %162 : vector<16x64xf32>
    %164 = arith.mulf %163, %131 : vector<16x64xf32>
    %cst_66 = arith.constant 0.497469246 : f32
    %165 = vector.broadcast %cst_66 : f32 to vector<16x64xf32>
    %166 = arith.addf %164, %165 : vector<16x64xf32>
    %167 = arith.mulf %166, %131 : vector<16x64xf32>
    %cst_67 = arith.constant 1.000000e+00 : f32
    %168 = vector.broadcast %cst_67 : f32 to vector<16x64xf32>
    %169 = arith.addf %167, %168 : vector<16x64xf32>
    %170 = arith.mulf %130, %147 : vector<16x64xf32>
    %171 = arith.divf %170, %169 : vector<16x64xf32>
    %cst_68 = arith.constant 1.000000e+00 : f32
    %172 = vector.broadcast %cst_68 : f32 to vector<16x64xf32>
    %173 = arith.addf %172, %171 : vector<16x64xf32>
    %174 = arith.mulf %124, %173 : vector<16x64xf32>
    %c0_69 = arith.constant 0 : index
    %c0_70 = arith.constant 0 : index
    %c0_71 = arith.constant 0 : index
    %175 = vector.load %arg11[%c0_69, %c0_70, %c0_71] : memref<2x64x32xbf16, #tpu.memory_space<vmem>>, vector<1x64x32xbf16>
    %176 = vector.shape_cast %175 : vector<1x64x32xbf16> to vector<64x32xbf16>
    %177 = arith.truncf %174 : vector<16x64xf32> to vector<16x64xbf16>
    %cst_72 = arith.constant dense<0.000000e+00> : vector<16x32xf32>
    %178 = tpu.matmul %177, %176, %cst_72 {dimension_numbers = #tpu.dot_dimension_numbers<[1], [0], [0], [1], [0, 0, 1, 1], [], []>} : vector<16x64xbf16>, vector<64x32xbf16>, vector<16x32xf32> -> vector<16x32xf32>
    %179 = arith.addf %90, %178 : vector<16x32xf32>
    %c0_73 = arith.constant 0 : index
    %c0_74 = arith.constant 0 : index
    %c0_75 = arith.constant 0 : index
    %180 = vector.load %arg12[%c0_73, %c0_74, %c0_75] : memref<2x1x32xf32, #tpu.memory_space<vmem>>, vector<1x1x32xf32>
    %181 = vector.shape_cast %180 : vector<1x1x32xf32> to vector<1x32xf32>
    %182 = vector.broadcast %181 : vector<1x32xf32> to vector<16x32xf32>
    %183 = arith.addf %179, %182 : vector<16x32xf32>
    %c1 = arith.constant 1 : index
    %c0_76 = arith.constant 0 : index
    %c0_77 = arith.constant 0 : index
    %184 = vector.load %arg2[%c1, %c0_76, %c0_77] : memref<2x1x32xf32, #tpu.memory_space<vmem>>, vector<1x1x32xf32>
    %185 = vector.shape_cast %184 : vector<1x1x32xf32> to vector<1x32xf32>
    %c1_78 = arith.constant 1 : index
    %c0_79 = arith.constant 0 : index
    %c0_80 = arith.constant 0 : index
    %186 = vector.load %arg3[%c1_78, %c0_79, %c0_80] : memref<2x1x32xf32, #tpu.memory_space<vmem>>, vector<1x1x32xf32>
    %187 = vector.shape_cast %186 : vector<1x1x32xf32> to vector<1x32xf32>
    %cst_81 = arith.constant dense<0.000000e+00> : vector<16xf32>
    %188 = vector.multi_reduction <add>, %183, %cst_81 [1] : vector<16x32xf32> to vector<16xf32>
    %189 = vector.shape_cast %188 : vector<16xf32> to vector<16x1xf32>
    %cst_82 = arith.constant 3.200000e+01 : f32
    %190 = vector.broadcast %cst_82 : f32 to vector<16x1xf32>
    %191 = arith.divf %189, %190 : vector<16x1xf32>
    %192 = vector.broadcast %191 : vector<16x1xf32> to vector<16x32xf32>
    %193 = arith.subf %183, %192 : vector<16x32xf32>
    %194 = arith.mulf %193, %193 : vector<16x32xf32>
    %cst_83 = arith.constant dense<0.000000e+00> : vector<16xf32>
    %195 = vector.multi_reduction <add>, %194, %cst_83 [1] : vector<16x32xf32> to vector<16xf32>
    %196 = vector.shape_cast %195 : vector<16xf32> to vector<16x1xf32>
    %cst_84 = arith.constant 3.200000e+01 : f32
    %197 = vector.broadcast %cst_84 : f32 to vector<16x1xf32>
    %198 = arith.divf %196, %197 : vector<16x1xf32>
    %cst_85 = arith.constant 9.99999974E-6 : f32
    %199 = vector.broadcast %cst_85 : f32 to vector<16x1xf32>
    %200 = arith.addf %198, %199 : vector<16x1xf32>
    %201 = math.rsqrt %200 : vector<16x1xf32>
    %202 = vector.broadcast %201 : vector<16x1xf32> to vector<16x32xf32>
    %203 = arith.mulf %193, %202 : vector<16x32xf32>
    %204 = vector.broadcast %185 : vector<1x32xf32> to vector<16x32xf32>
    %205 = arith.mulf %203, %204 : vector<16x32xf32>
    %206 = vector.broadcast %187 : vector<1x32xf32> to vector<16x32xf32>
    %207 = arith.addf %205, %206 : vector<16x32xf32>
    %c1_86 = arith.constant 1 : index
    %c0_87 = arith.constant 0 : index
    %c0_88 = arith.constant 0 : index
    %208 = vector.load %arg4[%c1_86, %c0_87, %c0_88] : memref<2x32x96xbf16, #tpu.memory_space<vmem>>, vector<1x32x96xbf16>
    %209 = vector.shape_cast %208 : vector<1x32x96xbf16> to vector<32x96xbf16>
    %210 = arith.truncf %207 : vector<16x32xf32> to vector<16x32xbf16>
    %cst_89 = arith.constant dense<0.000000e+00> : vector<16x96xf32>
    %211 = tpu.matmul %210, %209, %cst_89 {dimension_numbers = #tpu.dot_dimension_numbers<[1], [0], [0], [1], [0, 0, 1, 1], [], []>} : vector<16x32xbf16>, vector<32x96xbf16>, vector<16x96xf32> -> vector<16x96xf32>
    %212 = vector.extract_strided_slice %211 {offsets = [0, 0], sizes = [16, 32], strides = [1, 1]} : vector<16x96xf32> to vector<16x32xf32>
    %cst_90 = arith.constant 2.500000e-01 : f32
    %213 = vector.broadcast %cst_90 : f32 to vector<16x32xf32>
    %214 = arith.mulf %212, %213 : vector<16x32xf32>
    %215 = vector.extract_strided_slice %211 {offsets = [0, 32], sizes = [16, 32], strides = [1, 1]} : vector<16x96xf32> to vector<16x32xf32>
    %216 = vector.extract_strided_slice %211 {offsets = [0, 64], sizes = [16, 32], strides = [1, 1]} : vector<16x96xf32> to vector<16x32xf32>
    %217 = vector.shape_cast %214 : vector<16x32xf32> to vector<2x8x32xf32>
    %218 = vector.shape_cast %215 : vector<16x32xf32> to vector<2x8x32xf32>
    %219 = vector.shape_cast %216 : vector<16x32xf32> to vector<2x8x32xf32>
    %c1_91 = arith.constant 1 : index
    %c0_92 = arith.constant 0 : index
    %c0_93 = arith.constant 0 : index
    %220 = vector.load %arg5[%c1_91, %c0_92, %c0_93] : memref<2x32x32xbf16, #tpu.memory_space<vmem>>, vector<1x32x32xbf16>
    %221 = vector.shape_cast %220 : vector<1x32x32xbf16> to vector<32x32xbf16>
    %c1_94 = arith.constant 1 : index
    %c0_95 = arith.constant 0 : index
    %c0_96 = arith.constant 0 : index
    %222 = vector.load %arg6[%c1_94, %c0_95, %c0_96] : memref<2x1x32xf32, #tpu.memory_space<vmem>>, vector<1x1x32xf32>
    %223 = vector.shape_cast %222 : vector<1x1x32xf32> to vector<1x32xf32>
    %224 = vector.extract_strided_slice %217 {offsets = [0, 0, 0], sizes = [2, 8, 16], strides = [1, 1, 1]} : vector<2x8x32xf32> to vector<2x8x16xf32>
    %225 = vector.extract_strided_slice %218 {offsets = [0, 0, 0], sizes = [2, 8, 16], strides = [1, 1, 1]} : vector<2x8x32xf32> to vector<2x8x16xf32>
    %226 = arith.truncf %224 : vector<2x8x16xf32> to vector<2x8x16xbf16>
    %227 = arith.truncf %225 : vector<2x8x16xf32> to vector<2x8x16xbf16>
    "tpu.trace_start"() <{level = 10 : i32, message = "bqd,bkd->bqk"}> : () -> ()
    %cst_97 = arith.constant dense<0.000000e+00> : vector<2x8x8xf32>
    %228 = tpu.matmul %226, %227, %cst_97 {dimension_numbers = #tpu.dot_dimension_numbers<[2], [2], [1], [1], [0, 0, 0, 1, 1, 1], [0], [0]>} : vector<2x8x16xbf16>, vector<2x8x16xbf16>, vector<2x8x8xf32> -> vector<2x8x8xf32>
    "tpu.trace_stop"() : () -> ()
    %cst_98 = arith.constant dense<0xFF800000> : vector<2x8xf32>
    %229 = vector.multi_reduction <maximumf>, %228, %cst_98 [2] : vector<2x8x8xf32> to vector<2x8xf32>
    %230 = vector.shape_cast %229 : vector<2x8xf32> to vector<2x8x1xf32>
    %231 = vector.broadcast %230 : vector<2x8x1xf32> to vector<2x8x8xf32>
    %232 = arith.subf %228, %231 : vector<2x8x8xf32>
    %233 = math.exp %232 : vector<2x8x8xf32>
    %cst_99 = arith.constant dense<0.000000e+00> : vector<2x8xf32>
    %234 = vector.multi_reduction <add>, %233, %cst_99 [2] : vector<2x8x8xf32> to vector<2x8xf32>
    %235 = vector.shape_cast %234 : vector<2x8xf32> to vector<2x8x1xf32>
    %236 = tpu.reciprocal %235 {approx = true} : vector<2x8x1xf32> -> vector<2x8x1xf32>
    %237 = vector.broadcast %236 : vector<2x8x1xf32> to vector<2x8x8xf32>
    %238 = arith.mulf %233, %237 : vector<2x8x8xf32>
    %239 = vector.extract_strided_slice %219 {offsets = [0, 0, 0], sizes = [2, 8, 16], strides = [1, 1, 1]} : vector<2x8x32xf32> to vector<2x8x16xf32>
    %240 = arith.truncf %238 : vector<2x8x8xf32> to vector<2x8x8xbf16>
    %241 = arith.truncf %239 : vector<2x8x16xf32> to vector<2x8x16xbf16>
    "tpu.trace_start"() <{level = 10 : i32, message = "bqk,bkd->bqd"}> : () -> ()
    %cst_100 = arith.constant dense<0.000000e+00> : vector<2x8x16xf32>
    %242 = tpu.matmul %240, %241, %cst_100 {dimension_numbers = #tpu.dot_dimension_numbers<[2], [1], [1], [2], [0, 0, 0, 1, 1, 2], [0], [0]>} : vector<2x8x8xbf16>, vector<2x8x16xbf16>, vector<2x8x16xf32> -> vector<2x8x16xf32>
    "tpu.trace_stop"() : () -> ()
    %243 = vector.shape_cast %242 : vector<2x8x16xf32> to vector<16x16xf32>
    %244 = vector.extract_strided_slice %221 {offsets = [0, 0], sizes = [16, 32], strides = [1, 1]} : vector<32x32xbf16> to vector<16x32xbf16>
    %245 = arith.truncf %243 : vector<16x16xf32> to vector<16x16xbf16>
    %cst_101 = arith.constant dense<0.000000e+00> : vector<16x32xf32>
    %246 = tpu.matmul %245, %244, %cst_101 {dimension_numbers = #tpu.dot_dimension_numbers<[1], [0], [0], [1], [0, 0, 1, 1], [], []>} : vector<16x16xbf16>, vector<16x32xbf16>, vector<16x32xf32> -> vector<16x32xf32>
    %247 = vector.broadcast %223 : vector<1x32xf32> to vector<16x32xf32>
    %248 = arith.addf %247, %246 : vector<16x32xf32>
    %249 = vector.extract_strided_slice %217 {offsets = [0, 0, 16], sizes = [2, 8, 16], strides = [1, 1, 1]} : vector<2x8x32xf32> to vector<2x8x16xf32>
    %250 = vector.extract_strided_slice %218 {offsets = [0, 0, 16], sizes = [2, 8, 16], strides = [1, 1, 1]} : vector<2x8x32xf32> to vector<2x8x16xf32>
    %251 = arith.truncf %249 : vector<2x8x16xf32> to vector<2x8x16xbf16>
    %252 = arith.truncf %250 : vector<2x8x16xf32> to vector<2x8x16xbf16>
    "tpu.trace_start"() <{level = 10 : i32, message = "bqd,bkd->bqk"}> : () -> ()
    %cst_102 = arith.constant dense<0.000000e+00> : vector<2x8x8xf32>
    %253 = tpu.matmul %251, %252, %cst_102 {dimension_numbers = #tpu.dot_dimension_numbers<[2], [2], [1], [1], [0, 0, 0, 1, 1, 1], [0], [0]>} : vector<2x8x16xbf16>, vector<2x8x16xbf16>, vector<2x8x8xf32> -> vector<2x8x8xf32>
    "tpu.trace_stop"() : () -> ()
    %cst_103 = arith.constant dense<0xFF800000> : vector<2x8xf32>
    %254 = vector.multi_reduction <maximumf>, %253, %cst_103 [2] : vector<2x8x8xf32> to vector<2x8xf32>
    %255 = vector.shape_cast %254 : vector<2x8xf32> to vector<2x8x1xf32>
    %256 = vector.broadcast %255 : vector<2x8x1xf32> to vector<2x8x8xf32>
    %257 = arith.subf %253, %256 : vector<2x8x8xf32>
    %258 = math.exp %257 : vector<2x8x8xf32>
    %cst_104 = arith.constant dense<0.000000e+00> : vector<2x8xf32>
    %259 = vector.multi_reduction <add>, %258, %cst_104 [2] : vector<2x8x8xf32> to vector<2x8xf32>
    %260 = vector.shape_cast %259 : vector<2x8xf32> to vector<2x8x1xf32>
    %261 = tpu.reciprocal %260 {approx = true} : vector<2x8x1xf32> -> vector<2x8x1xf32>
    %262 = vector.broadcast %261 : vector<2x8x1xf32> to vector<2x8x8xf32>
    %263 = arith.mulf %258, %262 : vector<2x8x8xf32>
    %264 = vector.extract_strided_slice %219 {offsets = [0, 0, 16], sizes = [2, 8, 16], strides = [1, 1, 1]} : vector<2x8x32xf32> to vector<2x8x16xf32>
    %265 = arith.truncf %263 : vector<2x8x8xf32> to vector<2x8x8xbf16>
    %266 = arith.truncf %264 : vector<2x8x16xf32> to vector<2x8x16xbf16>
    "tpu.trace_start"() <{level = 10 : i32, message = "bqk,bkd->bqd"}> : () -> ()
    %cst_105 = arith.constant dense<0.000000e+00> : vector<2x8x16xf32>
    %267 = tpu.matmul %265, %266, %cst_105 {dimension_numbers = #tpu.dot_dimension_numbers<[2], [1], [1], [2], [0, 0, 0, 1, 1, 2], [0], [0]>} : vector<2x8x8xbf16>, vector<2x8x16xbf16>, vector<2x8x16xf32> -> vector<2x8x16xf32>
    "tpu.trace_stop"() : () -> ()
    %268 = vector.shape_cast %267 : vector<2x8x16xf32> to vector<16x16xf32>
    %269 = vector.extract_strided_slice %221 {offsets = [16, 0], sizes = [16, 32], strides = [1, 1]} : vector<32x32xbf16> to vector<16x32xbf16>
    %270 = arith.truncf %268 : vector<16x16xf32> to vector<16x16xbf16>
    %cst_106 = arith.constant dense<0.000000e+00> : vector<16x32xf32>
    %271 = tpu.matmul %270, %269, %cst_106 {dimension_numbers = #tpu.dot_dimension_numbers<[1], [0], [0], [1], [0, 0, 1, 1], [], []>} : vector<16x16xbf16>, vector<16x32xbf16>, vector<16x32xf32> -> vector<16x32xf32>
    %272 = arith.addf %248, %271 : vector<16x32xf32>
    %273 = arith.addf %183, %272 : vector<16x32xf32>
    %c1_107 = arith.constant 1 : index
    %c0_108 = arith.constant 0 : index
    %c0_109 = arith.constant 0 : index
    %274 = vector.load %arg7[%c1_107, %c0_108, %c0_109] : memref<2x1x32xf32, #tpu.memory_space<vmem>>, vector<1x1x32xf32>
    %275 = vector.shape_cast %274 : vector<1x1x32xf32> to vector<1x32xf32>
    %c1_110 = arith.constant 1 : index
    %c0_111 = arith.constant 0 : index
    %c0_112 = arith.constant 0 : index
    %276 = vector.load %arg8[%c1_110, %c0_111, %c0_112] : memref<2x1x32xf32, #tpu.memory_space<vmem>>, vector<1x1x32xf32>
    %277 = vector.shape_cast %276 : vector<1x1x32xf32> to vector<1x32xf32>
    %cst_113 = arith.constant dense<0.000000e+00> : vector<16xf32>
    %278 = vector.multi_reduction <add>, %273, %cst_113 [1] : vector<16x32xf32> to vector<16xf32>
    %279 = vector.shape_cast %278 : vector<16xf32> to vector<16x1xf32>
    %cst_114 = arith.constant 3.200000e+01 : f32
    %280 = vector.broadcast %cst_114 : f32 to vector<16x1xf32>
    %281 = arith.divf %279, %280 : vector<16x1xf32>
    %282 = vector.broadcast %281 : vector<16x1xf32> to vector<16x32xf32>
    %283 = arith.subf %273, %282 : vector<16x32xf32>
    %284 = arith.mulf %283, %283 : vector<16x32xf32>
    %cst_115 = arith.constant dense<0.000000e+00> : vector<16xf32>
    %285 = vector.multi_reduction <add>, %284, %cst_115 [1] : vector<16x32xf32> to vector<16xf32>
    %286 = vector.shape_cast %285 : vector<16xf32> to vector<16x1xf32>
    %cst_116 = arith.constant 3.200000e+01 : f32
    %287 = vector.broadcast %cst_116 : f32 to vector<16x1xf32>
    %288 = arith.divf %286, %287 : vector<16x1xf32>
    %cst_117 = arith.constant 9.99999974E-6 : f32
    %289 = vector.broadcast %cst_117 : f32 to vector<16x1xf32>
    %290 = arith.addf %288, %289 : vector<16x1xf32>
    %291 = math.rsqrt %290 : vector<16x1xf32>
    %292 = vector.broadcast %291 : vector<16x1xf32> to vector<16x32xf32>
    %293 = arith.mulf %283, %292 : vector<16x32xf32>
    %294 = vector.broadcast %275 : vector<1x32xf32> to vector<16x32xf32>
    %295 = arith.mulf %293, %294 : vector<16x32xf32>
    %296 = vector.broadcast %277 : vector<1x32xf32> to vector<16x32xf32>
    %297 = arith.addf %295, %296 : vector<16x32xf32>
    %c1_118 = arith.constant 1 : index
    %c0_119 = arith.constant 0 : index
    %c0_120 = arith.constant 0 : index
    %298 = vector.load %arg9[%c1_118, %c0_119, %c0_120] : memref<2x32x64xbf16, #tpu.memory_space<vmem>>, vector<1x32x64xbf16>
    %299 = vector.shape_cast %298 : vector<1x32x64xbf16> to vector<32x64xbf16>
    %300 = arith.truncf %297 : vector<16x32xf32> to vector<16x32xbf16>
    %cst_121 = arith.constant dense<0.000000e+00> : vector<16x64xf32>
    %301 = tpu.matmul %300, %299, %cst_121 {dimension_numbers = #tpu.dot_dimension_numbers<[1], [0], [0], [1], [0, 0, 1, 1], [], []>} : vector<16x32xbf16>, vector<32x64xbf16>, vector<16x64xf32> -> vector<16x64xf32>
    %c1_122 = arith.constant 1 : index
    %c0_123 = arith.constant 0 : index
    %c0_124 = arith.constant 0 : index
    %302 = vector.load %arg10[%c1_122, %c0_123, %c0_124] : memref<2x1x64xf32, #tpu.memory_space<vmem>>, vector<1x1x64xf32>
    %303 = vector.shape_cast %302 : vector<1x1x64xf32> to vector<1x64xf32>
    %304 = vector.broadcast %303 : vector<1x64xf32> to vector<16x64xf32>
    %305 = arith.addf %301, %304 : vector<16x64xf32>
    %cst_125 = arith.constant 5.000000e-01 : f32
    %306 = vector.broadcast %cst_125 : f32 to vector<16x64xf32>
    %307 = arith.mulf %306, %305 : vector<16x64xf32>
    %cst_126 = arith.constant 0.707106769 : f32
    %308 = vector.broadcast %cst_126 : f32 to vector<16x64xf32>
    %309 = arith.mulf %305, %308 : vector<16x64xf32>
    %cst_127 = arith.constant -3.8325069 : f32
    %cst_128 = arith.constant 3.8325069 : f32
    %310 = vector.broadcast %cst_127 : f32 to vector<16x64xf32>
    %311 = arith.maximumf %310, %309 : vector<16x64xf32>
    %312 = vector.broadcast %cst_128 : f32 to vector<16x64xf32>
    %313 = arith.minimumf %312, %311 : vector<16x64xf32>
    %314 = arith.mulf %313, %313 : vector<16x64xf32>
    %cst_129 = arith.constant 0.000000e+00 : f32
    %315 = vector.broadcast %cst_129 : f32 to vector<16x64xf32>
    %316 = arith.mulf %315, %314 : vector<16x64xf32>
    %cst_130 = arith.constant 2.29050653E-4 : f32
    %317 = vector.broadcast %cst_130 : f32 to vector<16x64xf32>
    %318 = arith.addf %316, %317 : vector<16x64xf32>
    %319 = arith.mulf %318, %314 : vector<16x64xf32>
    %cst_131 = arith.constant 0.00340829091 : f32
    %320 = vector.broadcast %cst_131 : f32 to vector<16x64xf32>
    %321 = arith.addf %319, %320 : vector<16x64xf32>
    %322 = arith.mulf %321, %314 : vector<16x64xf32>
    %cst_132 = arith.constant 0.0509556942 : f32
    %323 = vector.broadcast %cst_132 : f32 to vector<16x64xf32>
    %324 = arith.addf %322, %323 : vector<16x64xf32>
    %325 = arith.mulf %324, %314 : vector<16x64xf32>
    %cst_133 = arith.constant 0.185208321 : f32
    %326 = vector.broadcast %cst_133 : f32 to vector<16x64xf32>
    %327 = arith.addf %325, %326 : vector<16x64xf32>
    %328 = arith.mulf %327, %314 : vector<16x64xf32>
    %cst_134 = arith.constant 1.12837911 : f32
    %329 = vector.broadcast %cst_134 : f32 to vector<16x64xf32>
    %330 = arith.addf %328, %329 : vector<16x64xf32>
    %cst_135 = arith.constant 0.000000e+00 : f32
    %331 = vector.broadcast %cst_135 : f32 to vector<16x64xf32>
    %332 = arith.mulf %331, %314 : vector<16x64xf32>
    %cst_136 = arith.constant -1.17916031E-7 : f32
    %333 = vector.broadcast %cst_136 : f32 to vector<16x64xf32>
    %334 = arith.addf %332, %333 : vector<16x64xf32>
    %335 = arith.mulf %334, %314 : vector<16x64xf32>
    %cst_137 = arith.constant 2.35479656E-5 : f32
    %336 = vector.broadcast %cst_137 : f32 to vector<16x64xf32>
    %337 = arith.addf %335, %336 : vector<16x64xf32>
    %338 = arith.mulf %337, %314 : vector<16x64xf32>
    %cst_138 = arith.constant 0.00101796258 : f32
    %339 = vector.broadcast %cst_138 : f32 to vector<16x64xf32>
    %340 = arith.addf %338, %339 : vector<16x64xf32>
    %341 = arith.mulf %340, %314 : vector<16x64xf32>
    %cst_139 = arith.constant 0.0140704699 : f32
    %342 = vector.broadcast %cst_139 : f32 to vector<16x64xf32>
    %343 = arith.addf %341, %342 : vector<16x64xf32>
    %344 = arith.mulf %343, %314 : vector<16x64xf32>
    %cst_140 = arith.constant 0.110985048 : f32
    %345 = vector.broadcast %cst_140 : f32 to vector<16x64xf32>
    %346 = arith.addf %344, %345 : vector<16x64xf32>
    %347 = arith.mulf %346, %314 : vector<16x64xf32>
    %cst_141 = arith.constant 0.497469246 : f32
    %348 = vector.broadcast %cst_141 : f32 to vector<16x64xf32>
    %349 = arith.addf %347, %348 : vector<16x64xf32>
    %350 = arith.mulf %349, %314 : vector<16x64xf32>
    %cst_142 = arith.constant 1.000000e+00 : f32
    %351 = vector.broadcast %cst_142 : f32 to vector<16x64xf32>
    %352 = arith.addf %350, %351 : vector<16x64xf32>
    %353 = arith.mulf %313, %330 : vector<16x64xf32>
    %354 = arith.divf %353, %352 : vector<16x64xf32>
    %cst_143 = arith.constant 1.000000e+00 : f32
    %355 = vector.broadcast %cst_143 : f32 to vector<16x64xf32>
    %356 = arith.addf %355, %354 : vector<16x64xf32>
    %357 = arith.mulf %307, %356 : vector<16x64xf32>
    %c1_144 = arith.constant 1 : index
    %c0_145 = arith.constant 0 : index
    %c0_146 = arith.constant 0 : index
    %358 = vector.load %arg11[%c1_144, %c0_145, %c0_146] : memref<2x64x32xbf16, #tpu.memory_space<vmem>>, vector<1x64x32xbf16>
    %359 = vector.shape_cast %358 : vector<1x64x32xbf16> to vector<64x32xbf16>
    %360 = arith.truncf %357 : vector<16x64xf32> to vector<16x64xbf16>
    %cst_147 = arith.constant dense<0.000000e+00> : vector<16x32xf32>
    %361 = tpu.matmul %360, %359, %cst_147 {dimension_numbers = #tpu.dot_dimension_numbers<[1], [0], [0], [1], [0, 0, 1, 1], [], []>} : vector<16x64xbf16>, vector<64x32xbf16>, vector<16x32xf32> -> vector<16x32xf32>
    %362 = arith.addf %273, %361 : vector<16x32xf32>
    %c1_148 = arith.constant 1 : index
    %c0_149 = arith.constant 0 : index
    %c0_150 = arith.constant 0 : index
    %363 = vector.load %arg12[%c1_148, %c0_149, %c0_150] : memref<2x1x32xf32, #tpu.memory_space<vmem>>, vector<1x1x32xf32>
    %364 = vector.shape_cast %363 : vector<1x1x32xf32> to vector<1x32xf32>
    %365 = vector.broadcast %364 : vector<1x32xf32> to vector<16x32xf32>
    %366 = arith.addf %362, %365 : vector<16x32xf32>
    %c0_151 = arith.constant 0 : index
    %c0_152 = arith.constant 0 : index
    %367 = vector.load %arg13[%c0_151, %c0_152] : memref<1x32xf32, #tpu.memory_space<vmem>>, vector<1x32xf32>
    %c0_153 = arith.constant 0 : index
    %c0_154 = arith.constant 0 : index
    %368 = vector.load %arg14[%c0_153, %c0_154] : memref<1x32xf32, #tpu.memory_space<vmem>>, vector<1x32xf32>
    %cst_155 = arith.constant dense<0.000000e+00> : vector<16xf32>
    %369 = vector.multi_reduction <add>, %366, %cst_155 [1] : vector<16x32xf32> to vector<16xf32>
    %370 = vector.shape_cast %369 : vector<16xf32> to vector<16x1xf32>
    %cst_156 = arith.constant 3.200000e+01 : f32
    %371 = vector.broadcast %cst_156 : f32 to vector<16x1xf32>
    %372 = arith.divf %370, %371 : vector<16x1xf32>
    %373 = vector.broadcast %372 : vector<16x1xf32> to vector<16x32xf32>
    %374 = arith.subf %366, %373 : vector<16x32xf32>
    %375 = arith.mulf %374, %374 : vector<16x32xf32>
    %cst_157 = arith.constant dense<0.000000e+00> : vector<16xf32>
    %376 = vector.multi_reduction <add>, %375, %cst_157 [1] : vector<16x32xf32> to vector<16xf32>
    %377 = vector.shape_cast %376 : vector<16xf32> to vector<16x1xf32>
    %cst_158 = arith.constant 3.200000e+01 : f32
    %378 = vector.broadcast %cst_158 : f32 to vector<16x1xf32>
    %379 = arith.divf %377, %378 : vector<16x1xf32>
    %cst_159 = arith.constant 9.99999974E-6 : f32
    %380 = vector.broadcast %cst_159 : f32 to vector<16x1xf32>
    %381 = arith.addf %379, %380 : vector<16x1xf32>
    %382 = math.rsqrt %381 : vector<16x1xf32>
    %383 = vector.broadcast %382 : vector<16x1xf32> to vector<16x32xf32>
    %384 = arith.mulf %374, %383 : vector<16x32xf32>
    %385 = vector.broadcast %367 : vector<1x32xf32> to vector<16x32xf32>
    %386 = arith.mulf %384, %385 : vector<16x32xf32>
    %387 = vector.broadcast %368 : vector<1x32xf32> to vector<16x32xf32>
    %388 = arith.addf %386, %387 : vector<16x32xf32>
    %c0_160 = arith.constant 0 : index
    %c0_161 = arith.constant 0 : index
    %389 = vector.load %arg15[%c0_160, %c0_161] : memref<16x32xf32, #tpu.memory_space<vmem>>, vector<16x32xf32>
    tpu.vector_store %arg15[%c0_160, %c0_161], %388 {strides = array<i32>} : memref<16x32xf32, #tpu.memory_space<vmem>>, vector<16x32xf32>,
    return
  }
  func.func @transform_0(%arg0: i32) -> (i32, i32) {
    %c0_i32 = arith.constant 0 : i32
    %c0_i32_0 = arith.constant 0 : i32
    return %arg0, %c0_i32 : i32, i32
  }
  func.func @transform_1(%arg0: i32) -> (i32, i32, i32) {
    %c0_i32 = arith.constant 0 : i32
    %c0_i32_0 = arith.constant 0 : i32
    %c0_i32_1 = arith.constant 0 : i32
    %c0_i32_2 = arith.constant 0 : i32
    return %c0_i32, %c0_i32_0, %c0_i32_1 : i32, i32, i32
  }
  func.func @transform_2(%arg0: i32) -> (i32, i32, i32) {
    %c0_i32 = arith.constant 0 : i32
    %c0_i32_0 = arith.constant 0 : i32
    %c0_i32_1 = arith.constant 0 : i32
    %c0_i32_2 = arith.constant 0 : i32
    return %c0_i32, %c0_i32_0, %c0_i32_1 : i32, i32, i32
  }
  func.func @transform_3(%arg0: i32) -> (i32, i32, i32) {
    %c0_i32 = arith.constant 0 : i32
    %c0_i32_0 = arith.constant 0 : i32
    %c0_i32_1 = arith.constant 0 : i32
    %c0_i32_2 = arith.constant 0 : i32
    return %c0_i32, %c0_i32_0, %c0_i32_1 : i32, i32, i32
  }
  func.func @transform_4(%arg0: i32) -> (i32, i32, i32) {
    %c0_i32 = arith.constant 0 : i32
    %c0_i32_0 = arith.constant 0 : i32
    %c0_i32_1 = arith.constant 0 : i32
    %c0_i32_2 = arith.constant 0 : i32
    return %c0_i32, %c0_i32_0, %c0_i32_1 : i32, i32, i32
  }
  func.func @transform_5(%arg0: i32) -> (i32, i32, i32) {
    %c0_i32 = arith.constant 0 : i32
    %c0_i32_0 = arith.constant 0 : i32
    %c0_i32_1 = arith.constant 0 : i32
    %c0_i32_2 = arith.constant 0 : i32
    return %c0_i32, %c0_i32_0, %c0_i32_1 : i32, i32, i32
  }
  func.func @transform_6(%arg0: i32) -> (i32, i32, i32) {
    %c0_i32 = arith.constant 0 : i32
    %c0_i32_0 = arith.constant 0 : i32
    %c0_i32_1 = arith.constant 0 : i32
    %c0_i32_2 = arith.constant 0 : i32
    return %c0_i32, %c0_i32_0, %c0_i32_1 : i32, i32, i32
  }
  func.func @transform_7(%arg0: i32) -> (i32, i32, i32) {
    %c0_i32 = arith.constant 0 : i32
    %c0_i32_0 = arith.constant 0 : i32
    %c0_i32_1 = arith.constant 0 : i32
    %c0_i32_2 = arith.constant 0 : i32
    return %c0_i32, %c0_i32_0, %c0_i32_1 : i32, i32, i32
  }
  func.func @transform_8(%arg0: i32) -> (i32, i32, i32) {
    %c0_i32 = arith.constant 0 : i32
    %c0_i32_0 = arith.constant 0 : i32
    %c0_i32_1 = arith.constant 0 : i32
    %c0_i32_2 = arith.constant 0 : i32
    return %c0_i32, %c0_i32_0, %c0_i32_1 : i32, i32, i32
  }
  func.func @transform_9(%arg0: i32) -> (i32, i32, i32) {
    %c0_i32 = arith.constant 0 : i32
    %c0_i32_0 = arith.constant 0 : i32
    %c0_i32_1 = arith.constant 0 : i32
    %c0_i32_2 = arith.constant 0 : i32
    return %c0_i32, %c0_i32_0, %c0_i32_1 : i32, i32, i32
  }
  func.func @transform_10(%arg0: i32) -> (i32, i32, i32) {
    %c0_i32 = arith.constant 0 : i32
    %c0_i32_0 = arith.constant 0 : i32
    %c0_i32_1 = arith.constant 0 : i32
    %c0_i32_2 = arith.constant 0 : i32
    return %c0_i32, %c0_i32_0, %c0_i32_1 : i32, i32, i32
  }
  func.func @transform_11(%arg0: i32) -> (i32, i32, i32) {
    %c0_i32 = arith.constant 0 : i32
    %c0_i32_0 = arith.constant 0 : i32
    %c0_i32_1 = arith.constant 0 : i32
    %c0_i32_2 = arith.constant 0 : i32
    return %c0_i32, %c0_i32_0, %c0_i32_1 : i32, i32, i32
  }
  func.func @transform_12(%arg0: i32) -> (i32, i32) {
    %c0_i32 = arith.constant 0 : i32
    %c0_i32_0 = arith.constant 0 : i32
    %c0_i32_1 = arith.constant 0 : i32
    return %c0_i32, %c0_i32_0 : i32, i32
  }
  func.func @transform_13(%arg0: i32) -> (i32, i32) {
    %c0_i32 = arith.constant 0 : i32
    %c0_i32_0 = arith.constant 0 : i32
    %c0_i32_1 = arith.constant 0 : i32
    return %c0_i32, %c0_i32_0 : i32, i32
  }
  func.func @transform_14(%arg0: i32) -> (i32, i32) {
    %c0_i32 = arith.constant 0 : i32
    %c0_i32_0 = arith.constant 0 : i32
    return %arg0, %c0_i32 : i32, i32
  }
}

</mosaic_0001>

<bundles_post_ra>
// kernel: tpu_custom_call.1
= control target key start
LH: loop header
LB: loop body
LE: loop exit
PB: predicated region body
PF: predicated region fallthrough
CT: control target
= control target key end

     0   :  { %19 = vsyncpa [#allocation3], 0  ;;  %s2302_s0 = inlined_call_operand.hbm [shape: f32[16,32], index: 0, kind: input, shape index: {}]   ;;  %s2303_s1 = inlined_call_operand.hbm [shape: f32[2,1,32], index: 1, kind: input, shape index: {}]   ;;  %s2304_s2 = inlined_call_operand.hbm [shape: f32[2,1,32], index: 2, kind: input, shape index: {}]   ;;  %s2305_s3 = inlined_call_operand.vmem [shape: bf16[2,32,96], index: 3, kind: input, shape index: {}]   ;;  %s2306_s4 = inlined_call_operand.vmem [shape: bf16[2,32,32], index: 4, kind: input, shape index: {}]   ;;  %s2307_s5 = inlined_call_operand.vmem [shape: f32[2,1,32], index: 5, kind: input, shape index: {}]   ;;  %s2308_s6 = inlined_call_operand.vmem [shape: f32[2,1,32], index: 6, kind: input, shape index: {}]   ;;  %s2309_s7 = inlined_call_operand.hbm [shape: f32[2,1,32], index: 7, kind: input, shape index: {}]   ;;  %s2310_s8 = inlined_call_operand.vmem [shape: bf16[2,32,64], index: 8, kind: input, shape index: {}]   ;;  %s2311_s9 = inlined_call_operand.vmem [shape: f32[2,1,64], index: 9, kind: input, shape index: {}]   ;;  %s2312_s10 = inlined_call_operand.vmem [shape: bf16[2,64,32], index: 10, kind: input, shape index: {}]   ;;  %s2313_s11 = inlined_call_operand.vmem [shape: f32[2,1,32], index: 11, kind: input, shape index: {}]   ;;  %s2314_s12 = inlined_call_operand.vmem [shape: f32[1,32], index: 12, kind: input, shape index: {}]   ;;  %s2315_s13 = inlined_call_operand.vmem [shape: f32[1,32], index: 13, kind: input, shape index: {}]   ;;  %s2316_s14 = inlined_call_operand.hbm [shape: f32[16,32], index: 14, kind: output, shape index: {}]  }
   0x1   :  { %20 = vsyncpa [#allocation6], 0 }
   0x2   :  { %21 = vsyncpa [#allocation9], 0  ;;  %s40_s15 = sshll.u32 %s2303_s1, 4  ;;  %s41_s15 = int_to_ptr.hbm [resolvable:$true] %s40_s15 }
   0x3   :  { %22 = vsyncpa [#allocation4], 0  ;;  %s1859_s16 = smov [#allocation5]   ;;  %s27_s20 = sshll.u32 %s2302_s0, 4  ;;  %s28_s20 = int_to_ptr.hbm [resolvable:$true] %s27_s20 }
   0x4   :  { %s42_s17 = sshll.u32 %s1859_s16, 4  ;;  %s1860_s21 = smov 16   ;;  %s43_s17 = int_to_ptr.vmem [resolvable:$true] %s42_s17 }
   0x5   :  { %s1861_s22 = smov 1   ;;  %s1862_s23 = smov [#allocation2]  }
   0x6   :  { %48 = dma.hbm_to_vmem [thread:$0]  %s41_s15, 32, %s43_s17, [#allocation6], %s1860_s21, %s1860_s21, %s1861_s22  }
   0x7   :  { %s29_s24 = sshll.u32 %s1862_s23, 4  ;;  %s1863_s25 = smov 128   ;;  %s30_s24 = int_to_ptr.vmem [resolvable:$true] %s29_s24 }
   0x8   :  { %s1864_s26 = smov 8   ;;  %s53_s28 = sshll.u32 %s2304_s2, 4  ;;  %s54_s28 = int_to_ptr.hbm [resolvable:$true] %s53_s28 }
   0x9   :  { %35 = dma.hbm_to_vmem [thread:$0]  %s28_s20, 256, %s30_s24, [#allocation3], %s1863_s25, %s1863_s25, %s1864_s26  }
   0xa   :  { %s1865_s29 = smov [#allocation7]   ;;  %s74_s16 = sshll.u32 %s2309_s7, 4  ;;  %s75_s16 = int_to_ptr.hbm [resolvable:$true] %s74_s16 }
   0xb   :  { %s55_s0 = sshll.u32 %s1865_s29, 4  ;;  %s1866_s17 = smov [#allocation8]   ;;  %s56_s0 = int_to_ptr.vmem [resolvable:$true] %s55_s0 }
   0xc   :  { %61 = dma.hbm_to_vmem [thread:$0]  %s54_s28, 32, %s56_s0, [#allocation6], %s1860_s21, %s1860_s21, %s1861_s22  }
   0xd   :  { %s76_s18 = sshll.u32 %s1866_s17, 4  ;;  %s77_s18 = int_to_ptr.vmem [resolvable:$true] %s76_s18 }
   0xe   :  { %82 = dma.hbm_to_vmem [thread:$0]  %s75_s16, 32, %s77_s18, [#allocation9], %s1860_s21, %s1860_s21, %s1861_s22  }
   0xf   :  { %1851 = dma.done.wait [#allocation3], 256  }
  0x10   :  { %1852 = vsyncadd [#allocation3], 4294967040 }
  0x11   :  { %1853 = dma.done.wait [#allocation6], 64  }
  0x12   :  { %1854 = vsyncadd [#allocation6], 4294967232 }
  0x13   :  { %1855 = dma.done.wait [#allocation9], 32  }
  0x14   :  { %1856 = vsyncadd [#allocation9], 4294967264  ;;  %vm116_vm0 = vcmask 261120   ;;  %v1964_v0 = vld [vmem:[#allocation2] sm:$0xff]  ;;  %v1968_v2 = vld [vmem:[#allocation2 + $0x8] sm:$0xff]  ;;  %v1867_v4 = vmov 32.0  }
  0x15   :  { %v117_v1 = vsel %vm116_vm0, %v1964_v0, 0.0  ;;  %v120_v3 = vsel %vm116_vm0, %v1968_v2, 0.0  ;;  %1669 = vrcp.f32 %v1867_v4  ;;  %v1619_v21 = vld [vmem:[%s2305_s3 + $0x8] sm:$0xff]  ;;  %v1618_v23 = vld [vmem:[%s2305_s3] sm:$0xff]  ;;  %v1653_v42 = vld [vmem:[#allocation5] ss:$0 sm:$0xff] }
  0x16   :  { %118 = vadd.xlane.f32.xlu0 %v117_v1  ;;  %204 = vmatpush.bf16.msra.mxu0 %v1619_v21  ;;  %v1654_v47 = vld [vmem:[#allocation7] ss:$0 sm:$0xff]  ;;  %s1868_s21 = smov 80   ;;  %s1869_s22 = smov 96   ;;  %vm228_vm8 = vcmask 130048   ;;  %vm272_vm9 = vcmask 64512  }
  0x17   :  { %s1870_s23 = smov 112   ;;  %s1871_s24 = smov 64   ;;  %vm302_vm10 = vcmask 1043456  }
  0x18   :  { %s1872_s1 = smov 48  }
  0x1a   :  { %205 = vmatpush.bf16.msra.mxu0 %v1618_v23 }
  0x1b   :  { %v1670_v5 = vpop.eup %1669 }
  0x1c   :  { %v124_v6 = vmul.f32 32.0, %v1670_v5  ;;  %vm128_vm1 = vweird.f32 %v1670_v5 }
  0x1e   :  { %121 = vadd.xlane.f32.xlu0 %v120_v3  ;;  %v125_v7 = vsub.f32 1.0, %v124_v6 }
  0x20   :  { %v126_v8 = vmul.f32 %v1670_v5, %v125_v7 }
  0x22   :  { %v127_v9 = vadd.f32 %v1670_v5, %v126_v8 }
  0x24   :  { %v1972_v10 = vsel %vm128_vm1, %v1670_v5, %v127_v9 }
  0x89   :  { %v119_v11 = vpop.xlane.xlu0 %118 }
  0x8a   :  { %v130_v12 = vmul.f32 %v1972_v10, %v119_v11 }
  0x8c   :  { %v132_v13 = vsub.f32 %v1964_v0, %v130_v12 }
  0x8e   :  { %v134_v14 = vmul.f32 %v132_v13, %v132_v13 }
  0x90   :  { %v136_v15 = vsel %vm116_vm0, %v134_v14, 0.0 }
  0x91   :  { %137 = vadd.xlane.f32.xlu1 %v136_v15  ;;  %v122_v16 = vpop.xlane.xlu0 %121 }
  0x92   :  { %v131_v17 = vmul.f32 %v1972_v10, %v122_v16 }
  0x94   :  { %v133_v18 = vsub.f32 %v1968_v2, %v131_v17 }
  0x96   :  { %v135_v19 = vmul.f32 %v133_v18, %v133_v18 }
  0x98   :  { %v139_v20 = vsel %vm116_vm0, %v135_v19, 0.0 }
  0x99   :  { %140 = vadd.xlane.f32.xlu1 %v139_v20 }
 0x104   :  { %v138_v22 = vpop.xlane.xlu1 %137 }
 0x105   :  { %v142_v24 = vmul.f32 %v138_v22, %v1972_v10 }
 0x107   :  { %v144_v25 = vadd.f32 1e-05, %v142_v24 }
 0x109   :  { %1671 = vrsqrt.f32 %v144_v25  ;;  %vm152_vm3 = vweird.f32 %v144_v25 }
 0x10c   :  { %v141_v26 = vpop.xlane.xlu1 %140 }
 0x10d   :  { %v143_v27 = vmul.f32 %v141_v26, %v1972_v10 }
 0x10f   :  { %v1672_v28 = vpop.eup %1671  ;;  %v145_v29 = vadd.f32 1e-05, %v143_v27 }
 0x110   :  { %v147_v30 = vmul.f32 %v1672_v28, %v144_v25  ;;  %vm153_vm2 = vweird.f32 %v1672_v28 }
 0x111   :  { %1673 = vrsqrt.f32 %v145_v29  ;;  %vm154_vm4 = vmor %vm152_vm3, %vm153_vm2  ;;  %vm162_vm6 = vweird.f32 %v145_v29 }
 0x112   :  { %v148_v31 = vmul.f32 %v1672_v28, %v147_v30 }
 0x114   :  { %v149_v32 = vmul.f32 0.5, %v148_v31 }
 0x116   :  { %v150_v33 = vsub.f32 1.5, %v149_v32 }
 0x117   :  { %v1674_v34 = vpop.eup %1673 }
 0x118   :  { %v151_v35 = vmul.f32 %v1672_v28, %v150_v33  ;;  %v157_v36 = vmul.f32 %v1674_v34, %v145_v29  ;;  %vm163_vm5 = vweird.f32 %v1674_v34 }
 0x119   :  { %vm164_vm7 = vmor %vm162_vm6, %vm163_vm5 }
 0x11a   :  { %v158_v37 = vmul.f32 %v1674_v34, %v157_v36  ;;  %v155_v38 = vsel %vm154_vm4, %v1672_v28, %v151_v35 }
 0x11b   :  { %v166_v41 = vmul.f32 %v155_v38, %v132_v13 }
 0x11c   :  { %v159_v39 = vmul.f32 0.5, %v158_v37 }
 0x11d   :  { %v171_v46 = vmul.f32 %v1653_v42, %v166_v41 }
 0x11e   :  { %v160_v40 = vsub.f32 1.5, %v159_v39 }
 0x11f   :  { %v176_v49 = vadd.f32 %v1654_v47, %v171_v46 }
 0x120   :  { %v161_v43 = vmul.f32 %v1674_v34, %v160_v40 }
 0x122   :  { %v165_v44 = vsel %vm164_vm7, %v1674_v34, %v161_v43 }
 0x123   :  { %v167_v45 = vmul.f32 %v165_v44, %v133_v18 }
 0x125   :  { %v172_v48 = vmul.f32 %v1653_v42, %v167_v45 }
 0x127   :  { %v177_v50 = vadd.f32 %v1654_v47, %v172_v48 }
 0x129   :  { %v182_v51 = vpack.c.bf16 %v177_v50, %v176_v49 }
 0x12b   :  { %1492 = vmatmul.msk.bf16.vlgmr.msra.gmra.mxu0 %vm116_vm0, %v182_v51 }
 0x1a8   :  { %v207_v52 = vpop.f32.mrf.mxu0 }
 0x1a9   :  { %v221_v53 = vpack.c.bf16 %v207_v52, %v207_v52  ;;  %v212_v57 = vmul.f32 0.25, %v207_v52 }
 0x1ab   :  { %v224_v54 = vunpack.c.l.b16 %v221_v53  ;;  %v219_v60 = vpack.c.bf16 %v212_v57, %v212_v57 }
 0x1ad   :  { %v1989_v55 = vpack.c.b16 %v224_v54, %v224_v54  ;;  %v370_v62 = vunpack.c.l.b16 %v219_v60 }
 0x1af   :  { %374 = vrot.lane.b32.xlu0 %v1989_v55, %s1868_s21  ;;  %226 = vrot.lane.b32.xlu2 %v1989_v55, %s1869_s22  ;;  %v371_v3 = vpack.c.b16 %v370_v62, %v370_v62 }
 0x1b0   :  { %v209_v56 = vpop.f32.mrf.mxu0 }
 0x1b1   :  { %v222_v58 = vpack.c.bf16 %v209_v56, %v209_v56  ;;  %v213_v63 = vmul.f32 0.25, %v209_v56 }
 0x1b3   :  { %v249_v59 = vunpack.c.l.b16 %v222_v58  ;;  %v220_v1 = vpack.c.bf16 %v213_v63, %v213_v63 }
 0x1b5   :  { %v1995_v61 = vpack.c.b16 %v249_v59, %v249_v59  ;;  %v396_v4 = vunpack.c.l.b16 %v220_v1 }
 0x1b7   :  { %400 = vrot.lane.b32.xlu1 %v1995_v61, %s1868_s21  ;;  %251 = vrot.lane.b32.xlu2 %v1995_v61, %s1869_s22  ;;  %v397_v5 = vpack.c.b16 %v396_v4, %v396_v4 }
 0x1bf   :  { %372 = vrot.lane.b32.xlu2 %v371_v3, %s1870_s23 }
 0x1c7   :  { %398 = vrot.lane.b32.xlu2 %v397_v5, %s1870_s23 }
 0x209   :  { %v227_v6 = vpop.permute.xlu2 %226 }
 0x20a   :  { %v233_v7 = vsel %vm228_vm8, %v227_v6, 0 }
 0x20b   :  { %242 = vmatpush.bf16.xpose.msra.mxu1 %v233_v7 }
 0x211   :  { %v252_v8 = vpop.permute.xlu2 %251 }
 0x212   :  { %1493 = vmatmul.msk.bf16.vlgmr.msra.gmra.mxu1 %vm228_vm8, %v219_v60  ;;  %v257_v9 = vsel %vm228_vm8, %v252_v8, 0 }
 0x213   :  { %266 = vmatpush.bf16.xpose.msra.mxu2 %v257_v9 }
 0x219   :  { %v373_v13 = vpop.permute.xlu2 %372 }
 0x21a   :  { %1494 = vmatmul.msk.bf16.vlgmr.msra.gmra.mxu2 %vm228_vm8, %v220_v1  ;;  %v1620_v1 = vld [vmem:[%s2306_s4] sm:$0xff] }
 0x21b   :  { %357 = vmatpush.bf16.msrb.mxu0 %v1620_v1 }
 0x221   :  { %v375_v11 = vpop.permute.xlu0 %374  ;;  %v399_v16 = vpop.permute.xlu2 %398 }
 0x222   :  { %v380_v12 = vsel %vm228_vm8, %v375_v11, 0 }
 0x223   :  { %389 = vmatpush.bf16.xpose.msrb.mxu1 %v380_v12 }
 0x229   :  { %v401_v14 = vpop.permute.xlu1 %400 }
 0x22a   :  { %1502 = vmatmul.msk.bf16.vlgmr.msrb.gmra.mxu1 %vm228_vm8, %v373_v13  ;;  %v406_v15 = vsel %vm228_vm8, %v401_v14, 0 }
 0x22b   :  { %415 = vmatpush.bf16.xpose.msrb.mxu2 %v406_v15 }
 0x232   :  { %1503 = vmatmul.msk.bf16.vlgmr.msrb.gmra.mxu2 %vm228_vm8, %v399_v16 }
 0x28f   :  { %v244_v17 = vpop.f32.mrf.mxu1 }
 0x290   :  { %v273_v18 = vsel %vm272_vm9, %v244_v17, -inf }
 0x291   :  { %274 = vmax.xlane.f32.xlu2 %v273_v18  ;;  %v1621_v18 = vld [vmem:[%s2306_s4 + $0x8] sm:$0xff] }
 0x292   :  { %504 = vmatpush.bf16.msra.mxu1 %v1621_v18 }
 0x297   :  { %v246_v19 = vpop.f32.mrf.mxu1 }
 0x29d   :  { %v268_v20 = vpop.f32.mrf.mxu2 }
 0x29e   :  { %v276_v21 = vsel %vm272_vm9, %v268_v20, -inf }
 0x29f   :  { %277 = vmax.xlane.f32.xlu0 %v276_v21 }
 0x2a5   :  { %v270_v22 = vpop.f32.mrf.mxu2 }
 0x2a7   :  { %v391_v23 = vpop.f32.mrf.mxu1 }
 0x2a8   :  { %v421_v39 = vsel %vm272_vm9, %v391_v23, -inf }
 0x2a9   :  { %297 = vrot.lane.b32.xlu2 %v1989_v55, %s1871_s24 }
 0x2af   :  { %v393_v24 = vpop.f32.mrf.mxu1 }
 0x2b5   :  { %v417_v25 = vpop.f32.mrf.mxu2 }
 0x2b6   :  { %v424_v40 = vsel %vm272_vm9, %v417_v25, -inf }
 0x2bd   :  { %v419_v26 = vpop.f32.mrf.mxu2 }
 0x2be   :  { %v1655_v26 = vld [vmem:[%s2307_s5] ss:$0 sm:$0xff] }
 0x304   :  { %v275_v27 = vpop.xlane.xlu2 %274 }
 0x305   :  { %v279_v28 = vsub.f32 %v244_v17, %v275_v27 }
 0x307   :  { %v281_v29 = vmul.f32 1.442695, %v279_v28 }
 0x309   :  { %1675 = vpow2.f32 %v281_v29 }
 0x30c   :  { %v298_v30 = vpop.permute.xlu2 %297 }
 0x30d   :  { %v304_v31 = vsel %vm302_vm10, %v298_v30, 0 }
 0x30e   :  { %313 = vmatpush.bf16.msra.mxu3 %v304_v31 }
 0x30f   :  { %v1676_v32 = vpop.eup %1675 }
 0x310   :  { %v285_v33 = vsel %vm272_vm9, %v1676_v32, 0.0 }
 0x311   :  { %286 = vadd.xlane.f32.xlu1 %v285_v33 }
 0x312   :  { %v278_v34 = vpop.xlane.xlu0 %277 }
 0x313   :  { %v280_v35 = vsub.f32 %v268_v20, %v278_v34 }
 0x315   :  { %v283_v36 = vmul.f32 1.442695, %v280_v35 }
 0x317   :  { %1677 = vpow2.f32 %v283_v36 }
 0x31d   :  { %v1678_v37 = vpop.eup %1677 }
 0x31e   :  { %v288_v38 = vsel %vm272_vm9, %v1678_v37, 0.0 }
 0x31f   :  { %289 = vadd.xlane.f32.xlu0 %v288_v38 }
 0x327   :  { %422 = vmax.xlane.f32.xlu0 %v421_v39 }
 0x32a   :  { %319 = vrot.lane.b32.xlu1 %v1995_v61, %s1871_s24 }
 0x32f   :  { %425 = vmax.xlane.f32.xlu0 %v424_v40 }
 0x332   :  { %445 = vrot.lane.b32.xlu1 %v1989_v55, %s1872_s1 }
 0x384   :  { %v287_v41 = vpop.xlane.xlu1 %286 }
 0x385   :  { %1679 = vrcp.f32 %v287_v41 }
 0x38b   :  { %v1680_v42 = vpop.eup %1679 }
 0x38c   :  { %v293_v43 = vmul.f32 %v1680_v42, %v1676_v32 }
 0x38e   :  { %v295_v44 = vpack.c.bf16 %v293_v43, %v293_v43 }
 0x390   :  { %1495 = vmatmul.msk.bf16.vlgmr.msra.gmra.mxu3 %vm272_vm9, %v295_v44 }
 0x392   :  { %v290_v45 = vpop.xlane.xlu0 %289 }
 0x393   :  { %1681 = vrcp.f32 %v290_v45  ;;  %v1623_v45 = vld [vmem:[%s2310_s8 + $0x8] sm:$0xff] }
 0x394   :  { %601 = vmatpush.bf16.msra.mxu2 %v1623_v45  ;;  %v1626_v45 = vld [vmem:[%s2312_s10 + $0x10] sm:$0xff] }
 0x399   :  { %v1682_v46 = vpop.eup %1681 }
 0x39a   :  { %v423_v47 = vpop.xlane.xlu0 %422  ;;  %v294_v48 = vmul.f32 %v1682_v46, %v1678_v37 }
 0x39b   :  { %v427_v49 = vsub.f32 %v391_v23, %v423_v47 }
 0x39c   :  { %v320_v50 = vpop.permute.xlu1 %319  ;;  %v296_v53 = vpack.c.bf16 %v294_v48, %v294_v48  ;;  %v1622_v48 = vld [vmem:[%s2310_s8] sm:$0xff] }
 0x39d   :  { %v429_v51 = vmul.f32 1.442695, %v427_v49  ;;  %v325_v52 = vsel %vm302_vm10, %v320_v50, 0  ;;  %602 = vmatpush.bf16.msra.mxu2 %v1622_v48 }
 0x39e   :  { %334 = vmatpush.bf16.msrb.mxu3 %v325_v52 }
 0x39f   :  { %1683 = vpow2.f32 %v429_v51 }
 0x3a1   :  { %1496 = vmatmul.msk.bf16.vlgmr.msrb.gmra.mxu3 %vm272_vm9, %v296_v53 }
 0x3a2   :  { %v426_v54 = vpop.xlane.xlu0 %425 }
 0x3a3   :  { %v428_v55 = vsub.f32 %v417_v25, %v426_v54 }
 0x3a4   :  { %v446_v56 = vpop.permute.xlu1 %445 }
 0x3a5   :  { %v1684_v57 = vpop.eup %1683  ;;  %v431_v58 = vmul.f32 1.442695, %v428_v55  ;;  %v451_v59 = vsel %vm302_vm10, %v446_v56, 0 }
 0x3a6   :  { %460 = vmatpush.bf16.msra.mxu3 %v451_v59  ;;  %v433_v60 = vsel %vm272_vm9, %v1684_v57, 0.0 }
 0x3a7   :  { %1685 = vpow2.f32 %v431_v58  ;;  %434 = vadd.xlane.f32.xlu2 %v433_v60 }
 0x3ad   :  { %v1686_v62 = vpop.eup %1685 }
 0x3ae   :  { %v436_v63 = vsel %vm272_vm9, %v1686_v62, 0.0 }
 0x3af   :  { %437 = vadd.xlane.f32.xlu0 %v436_v63 }
 0x3c3   :  { %466 = vrot.lane.b32.xlu0 %v1995_v61, %s1872_s1 }
 0x413   :  { %v315_v3 = vpop.f32.mrf.mxu3 }
 0x41a   :  { %v435_v4 = vpop.xlane.xlu2 %434 }
 0x41b   :  { %1687 = vrcp.f32 %v435_v4  ;;  %v317_v5 = vpop.f32.mrf.mxu3  ;;  %v1656_v4 = vld [vmem:[%s2308_s6] ss:$0 sm:$0xff] }
 0x421   :  { %v1688_v6 = vpop.eup %1687 }
 0x422   :  { %v441_v7 = vmul.f32 %v1688_v6, %v1684_v57  ;;  %v438_v12 = vpop.xlane.xlu0 %437 }
 0x423   :  { %1689 = vrcp.f32 %v438_v12 }
 0x424   :  { %v443_v8 = vpack.c.bf16 %v441_v7, %v441_v7  ;;  %v336_v9 = vpop.f32.mrf.mxu3 }
 0x425   :  { %v340_v11 = vpack.c.bf16 %v336_v9, %v315_v3 }
 0x426   :  { %1504 = vmatmul.msk.bf16.vlgmr.msra.gmra.mxu3 %vm272_vm9, %v443_v8  ;;  %v1657_v8 = vld [vmem:[#allocation8] ss:$0 sm:$0xff] }
 0x427   :  { %1501 = vmatmul.msk.bf16.vlgmr.msrb.gmra.mxu0 %vm228_vm8, %v340_v11 }
 0x429   :  { %v1690_v13 = vpop.eup %1689 }
 0x42a   :  { %v442_v14 = vmul.f32 %v1690_v13, %v1686_v62 }
 0x42c   :  { %v338_v61 = vpop.f32.mrf.mxu3  ;;  %v444_v17 = vpack.c.bf16 %v442_v14, %v442_v14 }
 0x435   :  { %v467_v15 = vpop.permute.xlu0 %466 }
 0x436   :  { %v472_v16 = vsel %vm302_vm10, %v467_v15, 0  ;;  %v1658_v15 = vld [vmem:[%s2311_s9] ss:$0 sm:$0xff] }
 0x437   :  { %481 = vmatpush.bf16.msra.mxu0 %v472_v16 }
 0x43a   :  { %1505 = vmatmul.msk.bf16.vlgmr.msra.gmra.mxu0 %vm272_vm9, %v444_v17 }
 0x4a4   :  { %v359_v19 = vpop.f32.mrf.mxu0 }
 0x4a5   :  { %v367_v27 = vadd.f32 %v1655_v26, %v359_v19 }
 0x4a9   :  { %v462_v20 = vpop.f32.mrf.mxu3 }
 0x4ac   :  { %v361_v21 = vpop.f32.mrf.mxu0 }
 0x4ad   :  { %v368_v32 = vadd.f32 %v1655_v26, %v361_v21 }
 0x4b1   :  { %v464_v22 = vpop.f32.mrf.mxu3 }
 0x4b7   :  { %v483_v23 = vpop.f32.mrf.mxu0 }
 0x4b8   :  { %v487_v24 = vpack.c.bf16 %v483_v23, %v462_v20 }
 0x4ba   :  { %1510 = vmatmul.msk.bf16.vlgmr.msra.gmra.mxu1 %vm228_vm8, %v487_v24 }
 0x4bf   :  { %v485_v25 = vpop.f32.mrf.mxu0 }
 0x537   :  { %v506_v28 = vpop.f32.mrf.mxu1 }
 0x538   :  { %v511_v29 = vadd.f32 %v506_v28, %v367_v27 }
 0x53a   :  { %v2047_v30 = vadd.f32 %v511_v29, %v1964_v0 }
 0x53c   :  { %v517_v31 = vsel %vm116_vm0, %v2047_v30, 0.0 }
 0x53d   :  { %518 = vadd.xlane.f32.xlu1 %v517_v31 }
 0x53f   :  { %v508_v33 = vpop.f32.mrf.mxu1 }
 0x540   :  { %v512_v34 = vadd.f32 %v508_v33, %v368_v32 }
 0x542   :  { %v2052_v35 = vadd.f32 %v512_v34, %v1968_v2 }
 0x544   :  { %v520_v36 = vsel %vm116_vm0, %v2052_v35, 0.0 }
 0x545   :  { %521 = vadd.xlane.f32.xlu0 %v520_v36 }
 0x5b0   :  { %v519_v37 = vpop.xlane.xlu1 %518 }
 0x5b1   :  { %v523_v38 = vmul.f32 %v519_v37, %v1972_v10 }
 0x5b3   :  { %v525_v0 = vsub.f32 %v2047_v30, %v523_v38 }
 0x5b5   :  { %v527_v39 = vmul.f32 %v525_v0, %v525_v0 }
 0x5b7   :  { %v529_v40 = vsel %vm116_vm0, %v527_v39, 0.0  ;;  %v1627_v39 = vld [vmem:[%s2312_s10 + $0x18] sm:$0xff] }
 0x5b8   :  { %530 = vadd.xlane.f32.xlu2 %v529_v40  ;;  %v522_v41 = vpop.xlane.xlu0 %521  ;;  %742 = vmatpush.bf16.msrb.mxu3 %v1627_v39 }
 0x5b9   :  { %v524_v42 = vmul.f32 %v522_v41, %v1972_v10 }
 0x5bb   :  { %v526_v43 = vsub.f32 %v2052_v35, %v524_v42 }
 0x5bc   :  { %743 = vmatpush.bf16.msrb.mxu3 %v1626_v45 }
 0x5bd   :  { %v528_v2 = vmul.f32 %v526_v43, %v526_v43 }
 0x5bf   :  { %v532_v44 = vsel %vm116_vm0, %v528_v2, 0.0 }
 0x5c0   :  { %533 = vadd.xlane.f32.xlu2 %v532_v44 }
 0x62b   :  { %v531_v46 = vpop.xlane.xlu2 %530 }
 0x62c   :  { %v535_v47 = vmul.f32 %v531_v46, %v1972_v10 }
 0x62e   :  { %v537_v49 = vadd.f32 1e-05, %v535_v47 }
 0x630   :  { %1691 = vrsqrt.f32 %v537_v49  ;;  %vm545_vm12 = vweird.f32 %v537_v49 }
 0x633   :  { %v534_v50 = vpop.xlane.xlu2 %533 }
 0x634   :  { %v536_v51 = vmul.f32 %v534_v50, %v1972_v10 }
 0x636   :  { %v1692_v52 = vpop.eup %1691  ;;  %v538_v53 = vadd.f32 1e-05, %v536_v51 }
 0x637   :  { %v540_v54 = vmul.f32 %v1692_v52, %v537_v49  ;;  %vm546_vm11 = vweird.f32 %v1692_v52 }
 0x638   :  { %1693 = vrsqrt.f32 %v538_v53  ;;  %vm547_vm13 = vmor %vm545_vm12, %vm546_vm11  ;;  %vm555_vm15 = vweird.f32 %v538_v53 }
 0x639   :  { %v541_v55 = vmul.f32 %v1692_v52, %v540_v54 }
 0x63b   :  { %v542_v56 = vmul.f32 0.5, %v541_v55 }
 0x63d   :  { %v543_v57 = vsub.f32 1.5, %v542_v56 }
 0x63e   :  { %v1694_v58 = vpop.eup %1693 }
 0x63f   :  { %v544_v59 = vmul.f32 %v1692_v52, %v543_v57  ;;  %v550_v60 = vmul.f32 %v1694_v58, %v538_v53  ;;  %vm556_vm14 = vweird.f32 %v1694_v58 }
 0x640   :  { %vm557_vm1 = vmor %vm555_vm15, %vm556_vm14 }
 0x641   :  { %v551_v62 = vmul.f32 %v1694_v58, %v550_v60  ;;  %v548_v63 = vsel %vm547_vm13, %v1692_v52, %v544_v59  ;;  %v1625_v52 = vld [vmem:[%s2312_s10 + $0x8] sm:$0xff]  ;;  %v1624_v59 = vld [vmem:[%s2312_s10] sm:$0xff]  ;;  %vm734_vm13 = vcmask 523264  }
 0x642   :  { %v559_v5 = vmul.f32 %v548_v63, %v525_v0  ;;  %744 = vmatpush.bf16.msrb.mxu3 %v1625_v52 }
 0x643   :  { %v552_v1 = vmul.f32 0.5, %v551_v62 }
 0x644   :  { %v564_v9 = vmul.f32 %v1656_v4, %v559_v5 }
 0x645   :  { %v553_v3 = vsub.f32 1.5, %v552_v1 }
 0x646   :  { %v569_v61 = vadd.f32 %v1657_v8, %v564_v9  ;;  %745 = vmatpush.bf16.msrb.mxu3 %v1624_v59 }
 0x647   :  { %v554_v6 = vmul.f32 %v1694_v58, %v553_v3 }
 0x649   :  { %v558_v7 = vsel %vm557_vm1, %v1694_v58, %v554_v6 }
 0x64a   :  { %v560_v11 = vmul.f32 %v558_v7, %v526_v43 }
 0x64c   :  { %v565_v12 = vmul.f32 %v1656_v4, %v560_v11 }
 0x64e   :  { %v570_v13 = vadd.f32 %v1657_v8, %v565_v12 }
 0x650   :  { %v575_v14 = vpack.c.bf16 %v570_v13, %v569_v61 }
 0x652   :  { %1519 = vmatmul.msk.bf16.vlgmr.msra.gmra.mxu2 %vm116_vm0, %v575_v14 }
 0x6d5   :  { %v604_v16 = vpop.f32.mrf.mxu2 }
 0x6d6   :  { %v2077_v17 = vadd.f32 %v1658_v15, %v604_v16 }
 0x6d8   :  { %v611_v18 = vmul.f32 0.70710677, %v2077_v17 }
 0x6da   :  { %v2080_v19 = vclamps-f32 %v611_v18, 3.832507 }
 0x6dc   :  { %v617_v20 = vmul.f32 %v2080_v19, %v2080_v19 }
 0x6dd   :  { %v606_v21 = vpop.f32.mrf.mxu2 }
 0x6de   :  { %v619_v22 = vmul.f32 0.0, %v617_v20  ;;  %v2084_v23 = vadd.f32 %v1658_v15, %v606_v21 }
 0x6e0   :  { %v639_v24 = vadd.f32 -1.1791603e-07, %v619_v22  ;;  %v612_v25 = vmul.f32 0.70710677, %v2084_v23  ;;  %v621_v34 = vadd.f32 0.00022905065, %v619_v22 }
 0x6e2   :  { %v641_v26 = vmul.f32 %v639_v24, %v617_v20  ;;  %v2087_v27 = vclamps-f32 %v612_v25, 3.832507  ;;  %v623_v40 = vmul.f32 %v621_v34, %v617_v20 }
 0x6e4   :  { %v643_v28 = vadd.f32 2.3547966e-05, %v641_v26  ;;  %v2091_v29 = vmul.f32 %v2087_v27, %v2087_v27  ;;  %v625_v46 = vadd.f32 0.003408291, %v623_v40 }
 0x6e6   :  { %v645_v31 = vmul.f32 %v643_v28, %v617_v20  ;;  %v620_v32 = vmul.f32 0.0, %v2091_v29  ;;  %v627_v53 = vmul.f32 %v625_v46, %v617_v20 }
 0x6e8   :  { %v647_v33 = vadd.f32 0.0010179626, %v645_v31  ;;  %v640_v36 = vadd.f32 -1.1791603e-07, %v620_v32  ;;  %v622_v43 = vadd.f32 0.00022905065, %v620_v32 }
 0x6e9   :  { %v629_v60 = vadd.f32 0.050955694, %v627_v53 }
 0x6ea   :  { %v649_v37 = vmul.f32 %v647_v33, %v617_v20  ;;  %v642_v38 = vmul.f32 %v640_v36, %v2091_v29  ;;  %v624_v49 = vmul.f32 %v622_v43, %v2091_v29 }
 0x6eb   :  { %v631_v3 = vmul.f32 %v629_v60, %v617_v20 }
 0x6ec   :  { %v651_v0 = vadd.f32 0.01407047, %v649_v37  ;;  %v644_v41 = vadd.f32 2.3547966e-05, %v642_v38  ;;  %v626_v56 = vadd.f32 0.003408291, %v624_v49 }
 0x6ed   :  { %v633_v8 = vadd.f32 0.18520832, %v631_v3 }
 0x6ee   :  { %v653_v42 = vmul.f32 %v651_v0, %v617_v20  ;;  %v646_v2 = vmul.f32 %v644_v41, %v2091_v29  ;;  %v628_v63 = vmul.f32 %v626_v56, %v2091_v29 }
 0x6ef   :  { %v635_v13 = vmul.f32 %v633_v8, %v617_v20 }
 0x6f0   :  { %v655_v44 = vadd.f32 0.11098505, %v653_v42  ;;  %v648_v47 = vadd.f32 0.0010179626, %v646_v2  ;;  %v630_v5 = vadd.f32 0.050955694, %v628_v63 }
 0x6f1   :  { %v637_v24 = vadd.f32 1.1283791, %v635_v13 }
 0x6f2   :  { %v657_v48 = vmul.f32 %v655_v44, %v617_v20  ;;  %v650_v50 = vmul.f32 %v648_v47, %v2091_v29  ;;  %v632_v12 = vmul.f32 %v630_v5, %v2091_v29  ;;  %v610_v44 = vmul.f32 0.5, %v2084_v23 }
 0x6f3   :  { %v665_v33 = vmul.f32 %v2080_v19, %v637_v24  ;;  %v609_v19 = vmul.f32 0.5, %v2077_v17 }
 0x6f4   :  { %v659_v51 = vadd.f32 0.49746925, %v657_v48  ;;  %v652_v54 = vadd.f32 0.01407047, %v650_v50  ;;  %v634_v15 = vadd.f32 0.18520832, %v632_v12 }
 0x6f6   :  { %v661_v55 = vmul.f32 %v659_v51, %v617_v20  ;;  %v654_v57 = vmul.f32 %v652_v54, %v2091_v29  ;;  %v636_v26 = vmul.f32 %v634_v15, %v2091_v29 }
 0x6f8   :  { %v663_v58 = vadd.f32 1.0, %v661_v55  ;;  %v656_v62 = vadd.f32 0.11098505, %v654_v57  ;;  %v638_v36 = vadd.f32 1.1283791, %v636_v26 }
 0x6f9   :  { %v1660_v26 = vld [vmem:[#allocation5 + $0x1] ss:$0 sm:$0xff] }
 0x6fa   :  { %1695 = vrcp.f32 %v663_v58  ;;  %v658_v1 = vmul.f32 %v656_v62, %v2091_v29  ;;  %v678_v18 = vand.u32 2147483648, %v663_v58  ;;  %vm672_vm3 = vweird.f32 %v663_v58 }
 0x6fb   :  { %v676_v21 = vand.u32 2147483647, %v663_v58  ;;  %v666_v41 = vmul.f32 %v2087_v27, %v638_v36  ;;  %v1659_v27 = vld [vmem:[%s2313_s11] ss:$0 sm:$0xff] }
 0x6fc   :  { %v660_v4 = vadd.f32 0.49746925, %v658_v1  ;;  %v679_v31 = vor.u32 1.1754944e-38, %v678_v18  ;;  %v1629_v1 = vld [vmem:[%s2305_s3 + $0x18] sm:$0xff] }
 0x6fd   :  { %vm677_vm5 = vcmp.eq.f32.partialorder %v676_v21, 8.507059e+37  ;;  %845 = vmatpush.bf16.msrb.mxu0 %v1629_v1 }
 0x6fe   :  { %v662_v6 = vmul.f32 %v660_v4, %v2091_v29 }
 0x700   :  { %v1696_v7 = vpop.eup %1695  ;;  %v664_v11 = vadd.f32 1.0, %v662_v6  ;;  %v1628_v6 = vld [vmem:[%s2305_s3 + $0x10] sm:$0xff] }
 0x701   :  { %v668_v9 = vmul.f32 %v1696_v7, %v663_v58  ;;  %vm673_vm2 = vweird.f32 %v1696_v7  ;;  %846 = vmatpush.bf16.msrb.mxu0 %v1628_v6 }
 0x702   :  { %1697 = vrcp.f32 %v664_v11  ;;  %vm674_vm4 = vmor %vm672_vm3, %vm673_vm2  ;;  %v693_v34 = vand.u32 2147483648, %v664_v11  ;;  %v691_v38 = vand.u32 2147483647, %v664_v11  ;;  %vm687_vm7 = vweird.f32 %v664_v11 }
 0x703   :  { %v669_v61 = vsub.f32 1.0, %v668_v9 }
 0x704   :  { %v694_v40 = vor.u32 1.1754944e-38, %v693_v34  ;;  %vm692_vm12 = vcmp.eq.f32.partialorder %v691_v38, 8.507059e+37 }
 0x705   :  { %v670_v14 = vmul.f32 %v1696_v7, %v669_v61 }
 0x707   :  { %v671_v16 = vadd.f32 %v1696_v7, %v670_v14 }
 0x708   :  { %v1698_v22 = vpop.eup %1697 }
 0x709   :  { %v675_v25 = vsel %vm674_vm4, %v1696_v7, %v671_v16  ;;  %v683_v28 = vmul.f32 %v1698_v22, %v664_v11  ;;  %vm688_vm6 = vweird.f32 %v1698_v22 }
 0x70a   :  { %v680_v20 = vsel %vm677_vm5, %v679_v31, %v675_v25  ;;  %vm689_vm11 = vmor %vm687_vm7, %vm688_vm6 }
 0x70b   :  { %v684_v32 = vsub.f32 1.0, %v683_v28  ;;  %v681_v0 = vmul.f32 %v680_v20, %v665_v33  ;;  %v1661_v33 = vld [vmem:[#allocation7 + $0x1] ss:$0 sm:$0xff] }
 0x70d   :  { %v685_v37 = vmul.f32 %v1698_v22, %v684_v32  ;;  %v697_v43 = vadd.f32 1.0, %v681_v0 }
 0x70f   :  { %v686_v39 = vadd.f32 %v1698_v22, %v685_v37  ;;  %v699_v46 = vmul.f32 %v697_v43, %v609_v19 }
 0x711   :  { %v690_v29 = vsel %vm689_vm11, %v1698_v22, %v686_v39 }
 0x712   :  { %v695_v42 = vsel %vm692_vm12, %v694_v40, %v690_v29 }
 0x713   :  { %v696_v2 = vmul.f32 %v695_v42, %v666_v41 }
 0x715   :  { %v698_v45 = vadd.f32 1.0, %v696_v2 }
 0x717   :  { %v700_v47 = vmul.f32 %v698_v45, %v610_v44 }
 0x719   :  { %v709_v48 = vpack.c.bf16 %v700_v47, %v699_v46 }
 0x71b   :  { %1538 = vmatmul.msk.bf16.vlgmr.msrb.gmra.mxu3 %vm734_vm13, %v709_v48 }
 0x79e   :  { %v747_v49 = vpop.f32.mrf.mxu3 }
 0x79f   :  { %v752_v50 = vadd.f32 %v747_v49, %v2047_v30 }
 0x7a1   :  { %v2125_v51 = vadd.f32 %v1659_v27, %v752_v50 }
 0x7a3   :  { %v764_v17 = vsel %vm116_vm0, %v2125_v51, 0.0 }
 0x7a4   :  { %765 = vadd.xlane.f32.xlu2 %v764_v17 }
 0x7a6   :  { %v749_v23 = vpop.f32.mrf.mxu3 }
 0x7a7   :  { %v753_v52 = vadd.f32 %v749_v23, %v2052_v35 }
 0x7a9   :  { %v2130_v53 = vadd.f32 %v1659_v27, %v753_v52 }
 0x7ab   :  { %v767_v54 = vsel %vm116_vm0, %v2130_v53, 0.0 }
 0x7ac   :  { %768 = vadd.xlane.f32.xlu1 %v767_v54 }
 0x817   :  { %v766_v55 = vpop.xlane.xlu2 %765 }
 0x818   :  { %v770_v56 = vmul.f32 %v766_v55, %v1972_v10 }
 0x81a   :  { %v772_v30 = vsub.f32 %v2125_v51, %v770_v56 }
 0x81c   :  { %v774_v57 = vmul.f32 %v772_v30, %v772_v30 }
 0x81e   :  { %v776_v58 = vsel %vm116_vm0, %v774_v57, 0.0 }
 0x81f   :  { %777 = vadd.xlane.f32.xlu2 %v776_v58  ;;  %v769_v59 = vpop.xlane.xlu1 %768 }
 0x820   :  { %v771_v60 = vmul.f32 %v769_v59, %v1972_v10 }
 0x822   :  { %v773_v35 = vsub.f32 %v2130_v53, %v771_v60 }
 0x824   :  { %v775_v62 = vmul.f32 %v773_v35, %v773_v35 }
 0x826   :  { %v779_v63 = vsel %vm116_vm0, %v775_v62, 0.0 }
 0x827   :  { %780 = vadd.xlane.f32.xlu1 %v779_v63 }
 0x892   :  { %v778_v3 = vpop.xlane.xlu2 %777 }
 0x893   :  { %v782_v4 = vmul.f32 %v778_v3, %v1972_v10 }
 0x895   :  { %v784_v5 = vadd.f32 1e-05, %v782_v4 }
 0x897   :  { %1699 = vrsqrt.f32 %v784_v5  ;;  %vm792_vm15 = vweird.f32 %v784_v5 }
 0x89a   :  { %v781_v7 = vpop.xlane.xlu1 %780 }
 0x89b   :  { %v783_v8 = vmul.f32 %v781_v7, %v1972_v10 }
 0x89d   :  { %v1700_v9 = vpop.eup %1699  ;;  %v785_v11 = vadd.f32 1e-05, %v783_v8 }
 0x89e   :  { %v787_v12 = vmul.f32 %v1700_v9, %v784_v5  ;;  %vm793_vm14 = vweird.f32 %v1700_v9 }
 0x89f   :  { %1701 = vrsqrt.f32 %v785_v11  ;;  %vm794_vm1 = vmor %vm792_vm15, %vm793_vm14  ;;  %vm802_vm3 = vweird.f32 %v785_v11 }
 0x8a0   :  { %v788_v61 = vmul.f32 %v1700_v9, %v787_v12 }
 0x8a2   :  { %v789_v13 = vmul.f32 0.5, %v788_v61 }
 0x8a4   :  { %v790_v14 = vsub.f32 1.5, %v789_v13 }
 0x8a5   :  { %v1702_v15 = vpop.eup %1701 }
 0x8a6   :  { %v791_v16 = vmul.f32 %v1700_v9, %v790_v14  ;;  %v797_v18 = vmul.f32 %v1702_v15, %v785_v11  ;;  %vm803_vm2 = vweird.f32 %v1702_v15 }
 0x8a7   :  { %vm804_vm4 = vmor %vm802_vm3, %vm803_vm2 }
 0x8a8   :  { %v798_v21 = vmul.f32 %v1702_v15, %v797_v18  ;;  %v795_v22 = vsel %vm794_vm1, %v1700_v9, %v791_v16 }
 0x8a9   :  { %v806_v28 = vmul.f32 %v795_v22, %v772_v30 }
 0x8aa   :  { %v799_v24 = vmul.f32 0.5, %v798_v21 }
 0x8ab   :  { %v811_v20 = vmul.f32 %v1660_v26, %v806_v28 }
 0x8ac   :  { %v800_v25 = vsub.f32 1.5, %v799_v24 }
 0x8ad   :  { %v816_v37 = vadd.f32 %v1661_v33, %v811_v20 }
 0x8ae   :  { %v801_v31 = vmul.f32 %v1702_v15, %v800_v25 }
 0x8b0   :  { %v805_v32 = vsel %vm804_vm4, %v1702_v15, %v801_v31 }
 0x8b1   :  { %v807_v34 = vmul.f32 %v805_v32, %v773_v35 }
 0x8b3   :  { %v812_v36 = vmul.f32 %v1660_v26, %v807_v34 }
 0x8b5   :  { %v817_v38 = vadd.f32 %v1661_v33, %v812_v36  ;;  %v1630_v36 = vld [vmem:[%s2306_s4 + $0x10] sm:$0xff] }
 0x8b7   :  { %v823_v0 = vpack.c.bf16 %v817_v38, %v816_v37 }
 0x8b9   :  { %1551 = vmatmul.msk.bf16.vlgmr.msrb.gmra.mxu0 %vm116_vm0, %v823_v0 }
 0x936   :  { %v848_v39 = vpop.f32.mrf.mxu0 }
 0x937   :  { %v864_v40 = vpack.c.bf16 %v848_v39, %v848_v39  ;;  %v853_v46 = vmul.f32 0.25, %v848_v39 }
 0x939   :  { %v867_v41 = vunpack.c.l.b16 %v864_v40  ;;  %v862_v48 = vpack.c.bf16 %v853_v46, %v853_v46 }
 0x93b   :  { %v2149_v29 = vpack.c.b16 %v867_v41, %v867_v41  ;;  %v1010_v49 = vunpack.c.l.b16 %v862_v48 }
 0x93d   :  { %869 = vrot.lane.b32.xlu2 %v2149_v29, %s1869_s22  ;;  %v1011_v50 = vpack.c.b16 %v1010_v49, %v1010_v49 }
 0x93e   :  { %v850_v42 = vpop.f32.mrf.mxu0 }
 0x93f   :  { %v854_v43 = vmul.f32 0.25, %v850_v42  ;;  %v865_v2 = vpack.c.bf16 %v850_v42, %v850_v42 }
 0x941   :  { %v891_v19 = vunpack.c.l.b16 %v865_v2  ;;  %v863_v44 = vpack.c.bf16 %v854_v43, %v854_v43 }
 0x943   :  { %v892_v45 = vpack.c.b16 %v891_v19, %v891_v19  ;;  %v1036_v47 = vunpack.c.l.b16 %v863_v44 }
 0x945   :  { %1040 = vrot.lane.b32.xlu2 %v892_v45, %s1868_s21  ;;  %893 = vrot.lane.b32.xlu0 %v892_v45, %s1869_s22  ;;  %v1037_v27 = vpack.c.b16 %v1036_v47, %v1036_v47 }
 0x94d   :  { %1014 = vrot.lane.b32.xlu0 %v2149_v29, %s1868_s21  ;;  %1038 = vrot.lane.b32.xlu2 %v1037_v27, %s1870_s23 }
 0x955   :  { %1012 = vrot.lane.b32.xlu0 %v1011_v50, %s1870_s23 }
 0x997   :  { %v870_v17 = vpop.permute.xlu2 %869 }
 0x998   :  { %v875_v23 = vsel %vm228_vm8, %v870_v17, 0 }
 0x999   :  { %884 = vmatpush.bf16.xpose.msrb.mxu1 %v875_v23 }
 0x99f   :  { %v1041_v16 = vpop.permute.xlu2 %1040 }
 0x9a0   :  { %1557 = vmatmul.msk.bf16.vlgmr.msrb.gmra.mxu1 %vm228_vm8, %v862_v48  ;;  %v1046_v24 = vsel %vm228_vm8, %v1041_v16, 0 }
 0x9a1   :  { %997 = vmatpush.bf16.msra.mxu1 %v1630_v36 }
 0x9a7   :  { %v1039_v26 = vpop.permute.xlu2 %1038 }
 0x9b7   :  { %v894_v52 = vpop.permute.xlu0 %893 }
 0x9b8   :  { %v899_v54 = vsel %vm228_vm8, %v894_v52, 0 }
 0x9b9   :  { %908 = vmatpush.bf16.xpose.msrb.mxu2 %v899_v54 }
 0x9bf   :  { %v1015_v55 = vpop.permute.xlu0 %1014 }
 0x9c0   :  { %v1020_v56 = vsel %vm228_vm8, %v1015_v55, 0  ;;  %1558 = vmatmul.msk.bf16.vlgmr.msrb.gmra.mxu2 %vm228_vm8, %v863_v44 }
 0x9c1   :  { %1029 = vmatpush.bf16.xpose.msra.mxu2 %v1020_v56 }
 0x9c7   :  { %v1013_v30 = vpop.permute.xlu0 %1012 }
 0x9d0   :  { %1566 = vmatmul.msk.bf16.vlgmr.msra.gmra.mxu2 %vm228_vm8, %v1013_v30 }
 0xa1d   :  { %v886_v57 = vpop.f32.mrf.mxu1 }
 0xa1e   :  { %v914_v58 = vsel %vm272_vm9, %v886_v57, -inf }
 0xa1f   :  { %915 = vmax.xlane.f32.xlu1 %v914_v58 }
 0xa25   :  { %v888_v59 = vpop.f32.mrf.mxu1 }
 0xa43   :  { %v910_v60 = vpop.f32.mrf.mxu2 }
 0xa44   :  { %v917_v35 = vsel %vm272_vm9, %v910_v60, -inf }
 0xa45   :  { %918 = vmax.xlane.f32.xlu0 %v917_v35 }
 0xa4b   :  { %v912_v62 = vpop.f32.mrf.mxu2 }
 0xa53   :  { %v1031_v63 = vpop.f32.mrf.mxu2 }
 0xa54   :  { %v1061_v13 = vsel %vm272_vm9, %v1031_v63, -inf }
 0xa5b   :  { %v1033_v1 = vpop.f32.mrf.mxu2 }
 0xa92   :  { %v916_v3 = vpop.xlane.xlu1 %915 }
 0xa93   :  { %v920_v4 = vsub.f32 %v886_v57, %v916_v3 }
 0xa95   :  { %v922_v5 = vmul.f32 1.442695, %v920_v4 }
 0xa97   :  { %1703 = vpow2.f32 %v922_v5 }
 0xa9d   :  { %v1704_v6 = vpop.eup %1703 }
 0xa9e   :  { %v926_v7 = vsel %vm272_vm9, %v1704_v6, 0.0 }
 0xa9f   :  { %927 = vadd.xlane.f32.xlu1 %v926_v7  ;;  %v1662_v7 = vld [vmem:[%s2307_s5 + $0x1] ss:$0 sm:$0xff] }
 0xab8   :  { %938 = vrot.lane.b32.xlu1 %v2149_v29, %s1871_s24  ;;  %v919_v8 = vpop.xlane.xlu0 %918 }
 0xab9   :  { %v921_v9 = vsub.f32 %v910_v60, %v919_v8 }
 0xabb   :  { %v924_v11 = vmul.f32 1.442695, %v921_v9 }
 0xabd   :  { %1705 = vpow2.f32 %v924_v11 }
 0xac0   :  { %959 = vrot.lane.b32.xlu1 %v892_v45, %s1871_s24 }
 0xac3   :  { %v1706_v12 = vpop.eup %1705 }
 0xac4   :  { %v929_v61 = vsel %vm272_vm9, %v1706_v12, 0.0 }
 0xac5   :  { %930 = vadd.xlane.f32.xlu2 %v929_v61 }
 0xaea   :  { %1062 = vmax.xlane.f32.xlu1 %v1061_v13 }
 0xb03   :  { %1106 = vrot.lane.b32.xlu1 %v892_v45, %s1872_s1 }
 0xb12   :  { %v928_v14 = vpop.xlane.xlu1 %927 }
 0xb13   :  { %1707 = vrcp.f32 %v928_v14 }
 0xb19   :  { %v1708_v15 = vpop.eup %1707 }
 0xb1a   :  { %v934_v18 = vmul.f32 %v1708_v15, %v1704_v6 }
 0xb1c   :  { %v936_v25 = vpack.c.bf16 %v934_v18, %v934_v18 }
 0xb2a   :  { %v939_v21 = vpop.permute.xlu1 %938 }
 0xb2b   :  { %v944_v22 = vsel %vm302_vm10, %v939_v21, 0 }
 0xb2c   :  { %953 = vmatpush.bf16.msra.mxu3 %v944_v22 }
 0xb2f   :  { %1559 = vmatmul.msk.bf16.vlgmr.msra.gmra.mxu3 %vm272_vm9, %v936_v25 }
 0xb30   :  { %1055 = vmatpush.bf16.xpose.msrb.mxu3 %v1046_v24 }
 0xb32   :  { %v960_v28 = vpop.permute.xlu1 %959 }
 0xb33   :  { %v965_v31 = vsel %vm302_vm10, %v960_v28, 0 }
 0xb34   :  { %974 = vmatpush.bf16.msra.mxu0 %v965_v31 }
 0xb38   :  { %v931_v32 = vpop.xlane.xlu2 %930 }
 0xb39   :  { %1709 = vrcp.f32 %v931_v32 }
 0xb3f   :  { %v1710_v33 = vpop.eup %1709  ;;  %1567 = vmatmul.msk.bf16.vlgmr.msrb.gmra.mxu3 %vm228_vm8, %v1039_v26 }
 0xb40   :  { %v935_v20 = vmul.f32 %v1710_v33, %v1706_v12  ;;  %v1633_v33 = vld [vmem:[%s2310_s8 + $0x18] sm:$0xff] }
 0xb41   :  { %1245 = vmatpush.bf16.msra.mxu3 %v1633_v33  ;;  %v1636_v33 = vld [vmem:[%s2312_s10 + $0x30] sm:$0xff] }
 0xb42   :  { %v937_v34 = vpack.c.bf16 %v935_v20, %v935_v20 }
 0xb44   :  { %1560 = vmatmul.msk.bf16.vlgmr.msra.gmra.mxu0 %vm272_vm9, %v937_v34 }
 0xb5d   :  { %v1063_v37 = vpop.xlane.xlu1 %1062 }
 0xb5e   :  { %v1067_v38 = vsub.f32 %v1031_v63, %v1063_v37  ;;  %v1631_v63 = vld [vmem:[%s2306_s4 + $0x18] sm:$0xff]  ;;  %v1632_v37 = vld [vmem:[%s2310_s8 + $0x10] sm:$0xff] }
 0xb5f   :  { %1144 = vmatpush.bf16.msrb.mxu2 %v1631_v63  ;;  %1246 = vmatpush.bf16.msra.mxu3 %v1632_v37 }
 0xb60   :  { %v1069_v0 = vmul.f32 1.442695, %v1067_v38 }
 0xb62   :  { %1711 = vpow2.f32 %v1069_v0 }
 0xb68   :  { %v1712_v39 = vpop.eup %1711 }
 0xb69   :  { %v1073_v40 = vsel %vm272_vm9, %v1712_v39, 0.0 }
 0xb6a   :  { %1074 = vadd.xlane.f32.xlu2 %v1073_v40 }
 0xb75   :  { %v1107_v41 = vpop.permute.xlu1 %1106 }
 0xb76   :  { %v1112_v42 = vsel %vm302_vm10, %v1107_v41, 0 }
 0xb77   :  { %1121 = vmatpush.bf16.msrb.mxu1 %v1112_v42 }
 0xb82   :  { %1085 = vrot.lane.b32.xlu2 %v2149_v29, %s1872_s1  ;;  %s1469_s1 = sshll.u32 %s2316_s14, 4  ;;  %s1470_s1 = int_to_ptr.hbm [resolvable:$true] %s1469_s1 }
 0xbb2   :  { %v955_v43 = vpop.f32.mrf.mxu3 }
 0xbba   :  { %v957_v2 = vpop.f32.mrf.mxu3 }
 0xbc1   :  { %v976_v19 = vpop.f32.mrf.mxu0 }
 0xbc2   :  { %v980_v44 = vpack.c.bf16 %v976_v19, %v955_v43  ;;  %v1057_v45 = vpop.f32.mrf.mxu3 }
 0xbc3   :  { %v1064_v46 = vsel %vm272_vm9, %v1057_v45, -inf }
 0xbc4   :  { %1065 = vmax.xlane.f32.xlu0 %v1064_v46  ;;  %1565 = vmatmul.msk.bf16.vlgmr.msra.gmra.mxu1 %vm228_vm8, %v980_v44 }
 0xbc9   :  { %v978_v47 = vpop.f32.mrf.mxu0 }
 0xbca   :  { %v1059_v48 = vpop.f32.mrf.mxu3 }
 0xbdd   :  { %v1075_v27 = vpop.xlane.xlu2 %1074 }
 0xbde   :  { %1713 = vrcp.f32 %v1075_v27 }
 0xbe4   :  { %v1714_v49 = vpop.eup %1713 }
 0xbe5   :  { %v1081_v50 = vmul.f32 %v1714_v49, %v1712_v39  ;;  %v1086_v17 = vpop.permute.xlu2 %1085  ;;  %v1663_v49 = vld [vmem:[%s2308_s6 + $0x1] ss:$0 sm:$0xff] }
 0xbe6   :  { %v1091_v23 = vsel %vm302_vm10, %v1086_v17, 0 }
 0xbe7   :  { %v1083_v29 = vpack.c.bf16 %v1081_v50, %v1081_v50  ;;  %1100 = vmatpush.bf16.msrb.mxu0 %v1091_v23 }
 0xbea   :  { %1568 = vmatmul.msk.bf16.vlgmr.msrb.gmra.mxu0 %vm272_vm9, %v1083_v29  ;;  %v1664_v29 = vld [vmem:[#allocation8 + $0x1] ss:$0 sm:$0xff] }
 0xc37   :  { %v1066_v52 = vpop.xlane.xlu0 %1065 }
 0xc38   :  { %v1068_v54 = vsub.f32 %v1057_v45, %v1066_v52 }
 0xc3a   :  { %v1071_v55 = vmul.f32 1.442695, %v1068_v54 }
 0xc3c   :  { %1715 = vpow2.f32 %v1071_v55 }
 0xc41   :  { %v999_v1 = vpop.f32.mrf.mxu1 }
 0xc42   :  { %v1716_v56 = vpop.eup %1715  ;;  %v1007_v8 = vadd.f32 %v1662_v7, %v999_v1 }
 0xc43   :  { %v1076_v30 = vsel %vm272_vm9, %v1716_v56, 0.0 }
 0xc44   :  { %1077 = vadd.xlane.f32.xlu0 %v1076_v30 }
 0xc49   :  { %v1001_v3 = vpop.f32.mrf.mxu1 }
 0xc4a   :  { %v1008_v13 = vadd.f32 %v1662_v7, %v1001_v3 }
 0xc67   :  { %v1102_v57 = vpop.f32.mrf.mxu0 }
 0xc6f   :  { %v1104_v58 = vpop.f32.mrf.mxu0 }
 0xc70   :  { %v1665_v58 = vld [vmem:[%s2311_s9 + $0x1] ss:$0 sm:$0xff] }
 0xcb7   :  { %v1078_v59 = vpop.xlane.xlu0 %1077 }
 0xcb8   :  { %1717 = vrcp.f32 %v1078_v59 }
 0xcbe   :  { %v1718_v60 = vpop.eup %1717 }
 0xcbf   :  { %v1082_v35 = vmul.f32 %v1718_v60, %v1716_v56 }
 0xcc1   :  { %v1084_v62 = vpack.c.bf16 %v1082_v35, %v1082_v35 }
 0xcc3   :  { %1569 = vmatmul.msk.bf16.vlgmr.msrb.gmra.mxu1 %vm272_vm9, %v1084_v62 }
 0xd40   :  { %v1123_v4 = vpop.f32.mrf.mxu1 }
 0xd41   :  { %v1127_v5 = vpack.c.bf16 %v1123_v4, %v1102_v57 }
 0xd43   :  { %1574 = vmatmul.msk.bf16.vlgmr.msrb.gmra.mxu2 %vm228_vm8, %v1127_v5 }
 0xd48   :  { %v1125_v6 = vpop.f32.mrf.mxu1 }
 0xdc6   :  { %v1146_v9 = vpop.f32.mrf.mxu2 }
 0xdc7   :  { %v1151_v11 = vadd.f32 %v1146_v9, %v1007_v8 }
 0xdc9   :  { %v2201_v12 = vadd.f32 %v1151_v11, %v2125_v51 }
 0xdcb   :  { %v1159_v61 = vsel %vm116_vm0, %v2201_v12, 0.0 }
 0xdcc   :  { %1160 = vadd.xlane.f32.xlu0 %v1159_v61 }
 0xdce   :  { %v1148_v14 = vpop.f32.mrf.mxu2 }
 0xdcf   :  { %v1152_v15 = vadd.f32 %v1148_v14, %v1008_v13 }
 0xdd1   :  { %v2206_v16 = vadd.f32 %v1152_v15, %v2130_v53 }
 0xdd3   :  { %v1162_v18 = vsel %vm116_vm0, %v2206_v16, 0.0 }
 0xdd4   :  { %1163 = vadd.xlane.f32.xlu0 %v1162_v18 }
 0xe3f   :  { %v1161_v21 = vpop.xlane.xlu0 %1160 }
 0xe40   :  { %v1165_v22 = vmul.f32 %v1161_v21, %v1972_v10 }
 0xe42   :  { %v1167_v51 = vsub.f32 %v2201_v12, %v1165_v22 }
 0xe44   :  { %v1169_v24 = vmul.f32 %v1167_v51, %v1167_v51 }
 0xe46   :  { %v1171_v25 = vsel %vm116_vm0, %v1169_v24, 0.0  ;;  %v1637_v24 = vld [vmem:[%s2312_s10 + $0x38] sm:$0xff] }
 0xe47   :  { %1172 = vadd.xlane.f32.xlu0 %v1171_v25  ;;  %v1164_v26 = vpop.xlane.xlu0 %1163  ;;  %1386 = vmatpush.bf16.msra.mxu0 %v1637_v24 }
 0xe48   :  { %v1166_v28 = vmul.f32 %v1164_v26, %v1972_v10 }
 0xe4a   :  { %v1168_v31 = vsub.f32 %v2206_v16, %v1166_v28 }
 0xe4b   :  { %1387 = vmatpush.bf16.msra.mxu0 %v1636_v33 }
 0xe4c   :  { %v1170_v53 = vmul.f32 %v1168_v31, %v1168_v31 }
 0xe4e   :  { %v1174_v32 = vsel %vm116_vm0, %v1170_v53, 0.0 }
 0xe4f   :  { %1175 = vadd.xlane.f32.xlu2 %v1174_v32 }
 0xeba   :  { %v1173_v20 = vpop.xlane.xlu0 %1172 }
 0xebb   :  { %v1177_v34 = vmul.f32 %v1173_v20, %v1972_v10 }
 0xebd   :  { %v1179_v36 = vadd.f32 1e-05, %v1177_v34 }
 0xebf   :  { %1719 = vrsqrt.f32 %v1179_v36  ;;  %vm1187_vm9 = vweird.f32 %v1179_v36 }
 0xec2   :  { %v1176_v38 = vpop.xlane.xlu2 %1175 }
 0xec3   :  { %v1178_v0 = vmul.f32 %v1176_v38, %v1972_v10 }
 0xec5   :  { %v1720_v39 = vpop.eup %1719  ;;  %v1180_v40 = vadd.f32 1e-05, %v1178_v0 }
 0xec6   :  { %v1182_v41 = vmul.f32 %v1720_v39, %v1179_v36  ;;  %vm1188_vm8 = vweird.f32 %v1720_v39 }
 0xec7   :  { %1721 = vrsqrt.f32 %v1180_v40  ;;  %vm1189_vm10 = vmor %vm1187_vm9, %vm1188_vm8  ;;  %vm1197_vm6 = vweird.f32 %v1180_v40 }
 0xec8   :  { %v1183_v42 = vmul.f32 %v1720_v39, %v1182_v41 }
 0xeca   :  { %v1184_v43 = vmul.f32 0.5, %v1183_v42 }
 0xecc   :  { %v1185_v2 = vsub.f32 1.5, %v1184_v43 }
 0xecd   :  { %v1722_v19 = vpop.eup %1721 }
 0xece   :  { %v1186_v44 = vmul.f32 %v1720_v39, %v1185_v2  ;;  %v1192_v45 = vmul.f32 %v1722_v19, %v1180_v40  ;;  %vm1198_vm5 = vweird.f32 %v1722_v19 }
 0xecf   :  { %vm1199_vm7 = vmor %vm1197_vm6, %vm1198_vm5 }
 0xed0   :  { %v1193_v46 = vmul.f32 %v1722_v19, %v1192_v45  ;;  %v1190_v47 = vsel %vm1189_vm10, %v1720_v39, %v1186_v44  ;;  %v1635_v39 = vld [vmem:[%s2312_s10 + $0x28] sm:$0xff]  ;;  %v1634_v44 = vld [vmem:[%s2312_s10 + $0x20] sm:$0xff] }
 0xed1   :  { %v1201_v50 = vmul.f32 %v1190_v47, %v1167_v51  ;;  %1388 = vmatpush.bf16.msra.mxu0 %v1635_v39 }
 0xed2   :  { %v1194_v48 = vmul.f32 0.5, %v1193_v46 }
 0xed3   :  { %v1206_v52 = vmul.f32 %v1663_v49, %v1201_v50 }
 0xed4   :  { %v1195_v27 = vsub.f32 1.5, %v1194_v48 }
 0xed5   :  { %v1211_v56 = vadd.f32 %v1664_v29, %v1206_v52  ;;  %1389 = vmatpush.bf16.msra.mxu0 %v1634_v44 }
 0xed6   :  { %v1196_v17 = vmul.f32 %v1722_v19, %v1195_v27 }
 0xed8   :  { %v1200_v23 = vsel %vm1199_vm7, %v1722_v19, %v1196_v17 }
 0xed9   :  { %v1202_v54 = vmul.f32 %v1200_v23, %v1168_v31 }
 0xedb   :  { %v1207_v55 = vmul.f32 %v1663_v49, %v1202_v54 }
 0xedd   :  { %v1212_v30 = vadd.f32 %v1664_v29, %v1207_v55 }
 0xedf   :  { %v1218_v57 = vpack.c.bf16 %v1212_v30, %v1211_v56 }
 0xee1   :  { %1589 = vmatmul.msk.bf16.vlgmr.msra.gmra.mxu3 %vm116_vm0, %v1218_v57 }
 0xf64   :  { %v1248_v59 = vpop.f32.mrf.mxu3 }
 0xf65   :  { %v2231_v60 = vadd.f32 %v1665_v58, %v1248_v59 }
 0xf67   :  { %v1255_v35 = vmul.f32 0.70710677, %v2231_v60 }
 0xf69   :  { %v2234_v62 = vclamps-f32 %v1255_v35, 3.832507 }
 0xf6b   :  { %v1261_v63 = vmul.f32 %v2234_v62, %v2234_v62 }
 0xf6c   :  { %v1250_v1 = vpop.f32.mrf.mxu3 }
 0xf6d   :  { %v1263_v3 = vmul.f32 0.0, %v1261_v63  ;;  %v2238_v4 = vadd.f32 %v1665_v58, %v1250_v1 }
 0xf6f   :  { %v1283_v5 = vadd.f32 -1.1791603e-07, %v1263_v3  ;;  %v1256_v6 = vmul.f32 0.70710677, %v2238_v4  ;;  %v1265_v15 = vadd.f32 0.00022905065, %v1263_v3 }
 0xf71   :  { %v1285_v7 = vmul.f32 %v1283_v5, %v1261_v63  ;;  %v2241_v8 = vclamps-f32 %v1256_v6, 3.832507  ;;  %v1267_v25 = vmul.f32 %v1265_v15, %v1261_v63 }
 0xf73   :  { %v1287_v9 = vadd.f32 2.3547966e-05, %v1285_v7  ;;  %v2245_v11 = vmul.f32 %v2241_v8, %v2241_v8  ;;  %v1269_v20 = vadd.f32 0.003408291, %v1267_v25 }
 0xf75   :  { %v1289_v61 = vmul.f32 %v1287_v9, %v1261_v63  ;;  %v1264_v13 = vmul.f32 0.0, %v2245_v11  ;;  %v1271_v40 = vmul.f32 %v1269_v20, %v1261_v63 }
 0xf77   :  { %v1291_v14 = vadd.f32 0.0010179626, %v1289_v61  ;;  %v1284_v18 = vadd.f32 -1.1791603e-07, %v1264_v13  ;;  %v1266_v31 = vadd.f32 0.00022905065, %v1264_v13 }
 0xf78   :  { %v1273_v45 = vadd.f32 0.050955694, %v1271_v40 }
 0xf79   :  { %v1293_v21 = vmul.f32 %v1291_v14, %v1261_v63  ;;  %v1286_v22 = vmul.f32 %v1284_v18, %v2245_v11  ;;  %v1268_v37 = vmul.f32 %v1266_v31, %v2245_v11 }
 0xf7a   :  { %v1275_v27 = vmul.f32 %v1273_v45, %v1261_v63 }
 0xf7b   :  { %v1295_v51 = vadd.f32 0.01407047, %v1293_v21  ;;  %v1288_v26 = vadd.f32 2.3547966e-05, %v1286_v22  ;;  %v1270_v43 = vadd.f32 0.003408291, %v1268_v37 }
 0xf7c   :  { %v1277_v29 = vadd.f32 0.18520832, %v1275_v27  ;;  %v1666_v37 = vld [vmem:[%s2313_s11 + $0x1] ss:$0 sm:$0xff] }
 0xf7d   :  { %v1297_v28 = vmul.f32 %v1295_v51, %v1261_v63  ;;  %v1290_v53 = vmul.f32 %v1288_v26, %v2245_v11  ;;  %v1272_v47 = vmul.f32 %v1270_v43, %v2245_v11 }
 0xf7e   :  { %v1279_v30 = vmul.f32 %v1277_v29, %v1261_v63 }
 0xf7f   :  { %v1299_v32 = vadd.f32 0.11098505, %v1297_v28  ;;  %v1292_v34 = vadd.f32 0.0010179626, %v1290_v53  ;;  %v1274_v50 = vadd.f32 0.050955694, %v1272_v47 }
 0xf80   :  { %v1281_v5 = vadd.f32 1.1283791, %v1279_v30 }
 0xf81   :  { %v1301_v36 = vmul.f32 %v1299_v32, %v1261_v63  ;;  %v1294_v38 = vmul.f32 %v1292_v34, %v2245_v11  ;;  %v1276_v55 = vmul.f32 %v1274_v50, %v2245_v11  ;;  %v1254_v32 = vmul.f32 0.5, %v2238_v4 }
 0xf82   :  { %v1309_v14 = vmul.f32 %v2234_v62, %v1281_v5  ;;  %v1253_v62 = vmul.f32 0.5, %v2231_v60 }
 0xf83   :  { %v1303_v0 = vadd.f32 0.49746925, %v1301_v36  ;;  %v1296_v41 = vadd.f32 0.01407047, %v1294_v38  ;;  %v1278_v58 = vadd.f32 0.18520832, %v1276_v55 }
 0xf85   :  { %v1305_v42 = vmul.f32 %v1303_v0, %v1261_v63  ;;  %v1298_v2 = vmul.f32 %v1296_v41, %v2245_v11  ;;  %v1280_v7 = vmul.f32 %v1278_v58, %v2245_v11 }
 0xf87   :  { %v1307_v19 = vadd.f32 1.0, %v1305_v42  ;;  %v1300_v46 = vadd.f32 0.11098505, %v1298_v2  ;;  %v1282_v18 = vadd.f32 1.1283791, %v1280_v7 }
 0xf89   :  { %1723 = vrcp.f32 %v1307_v19  ;;  %v1302_v48 = vmul.f32 %v1300_v46, %v2245_v11  ;;  %v1322_v35 = vand.u32 2147483648, %v1307_v19  ;;  %vm1316_vm12 = vweird.f32 %v1307_v19 }
 0xf8a   :  { %v1320_v1 = vand.u32 2147483647, %v1307_v19  ;;  %v1310_v26 = vmul.f32 %v2241_v8, %v1282_v18 }
 0xf8b   :  { %v1304_v49 = vadd.f32 0.49746925, %v1302_v48  ;;  %v1323_v61 = vor.u32 1.1754944e-38, %v1322_v35 }
 0xf8c   :  { %vm1321_vm15 = vcmp.eq.f32.partialorder %v1320_v1, 8.507059e+37 }
 0xf8d   :  { %v1306_v17 = vmul.f32 %v1304_v49, %v2245_v11 }
 0xf8f   :  { %v1724_v23 = vpop.eup %1723  ;;  %v1308_v54 = vadd.f32 1.0, %v1306_v17 }
 0xf90   :  { %v1312_v52 = vmul.f32 %v1724_v23, %v1307_v19  ;;  %vm1317_vm11 = vweird.f32 %v1724_v23 }
 0xf91   :  { %1725 = vrcp.f32 %v1308_v54  ;;  %vm1318_vm14 = vmor %vm1316_vm12, %vm1317_vm11  ;;  %v1337_v15 = vand.u32 2147483648, %v1308_v54  ;;  %v1335_v22 = vand.u32 2147483647, %v1308_v54  ;;  %vm1331_vm2 = vweird.f32 %v1308_v54 }
 0xf92   :  { %v1313_v56 = vsub.f32 1.0, %v1312_v52 }
 0xf93   :  { %v1338_v25 = vor.u32 1.1754944e-38, %v1337_v15  ;;  %vm1336_vm4 = vcmp.eq.f32.partialorder %v1335_v22, 8.507059e+37 }
 0xf94   :  { %v1314_v57 = vmul.f32 %v1724_v23, %v1313_v56 }
 0xf96   :  { %v1315_v59 = vadd.f32 %v1724_v23, %v1314_v57 }
 0xf97   :  { %v1726_v3 = vpop.eup %1725 }
 0xf98   :  { %v1319_v6 = vsel %vm1318_vm14, %v1724_v23, %v1315_v59  ;;  %v1327_v9 = vmul.f32 %v1726_v3, %v1308_v54  ;;  %vm1332_vm1 = vweird.f32 %v1726_v3  ;;  %v1667_v59 = vld [vmem:[%s2314_s12] ss:$0 sm:$0xff]  ;;  %s1873_s12 = smov [#allocation10]  }
 0xf99   :  { %v1324_v63 = vsel %vm1321_vm15, %v1323_v61, %v1319_v6  ;;  %vm1333_vm3 = vmor %vm1331_vm2, %vm1332_vm1  ;;  %s1467_s22 = sshll.u32 %s1873_s12, 4  ;;  %s1468_s22 = int_to_ptr.vmem [resolvable:$true] %s1467_s22 }
 0xf9a   :  { %v1328_v13 = vsub.f32 1.0, %v1327_v9  ;;  %v1325_v51 = vmul.f32 %v1324_v63, %v1309_v14 }
 0xf9c   :  { %v1329_v21 = vmul.f32 %v1726_v3, %v1328_v13  ;;  %v1341_v31 = vadd.f32 1.0, %v1325_v51 }
 0xf9e   :  { %v1330_v24 = vadd.f32 %v1726_v3, %v1329_v21  ;;  %v1343_v20 = vmul.f32 %v1341_v31, %v1253_v62 }
 0xfa0   :  { %v1334_v11 = vsel %vm1333_vm3, %v1726_v3, %v1330_v24  ;;  %v1668_v3 = vld [vmem:[%s2315_s13] ss:$0 sm:$0xff] }
 0xfa1   :  { %v1339_v28 = vsel %vm1336_vm4, %v1338_v25, %v1334_v11 }
 0xfa2   :  { %v1340_v53 = vmul.f32 %v1339_v28, %v1310_v26 }
 0xfa4   :  { %v1342_v33 = vadd.f32 1.0, %v1340_v53 }
 0xfa6   :  { %v1344_v34 = vmul.f32 %v1342_v33, %v1254_v32 }
 0xfa8   :  { %v1354_v36 = vpack.c.bf16 %v1344_v34, %v1343_v20 }
 0xfaa   :  { %1616 = vmatmul.msk.bf16.vlgmr.msra.gmra.mxu0 %vm734_vm13, %v1354_v36 }
0x1027   :  { %v1391_v8 = vpop.f32.mrf.mxu0 }
0x1028   :  { %v1396_v38 = vadd.f32 %v1391_v8, %v2201_v12 }
0x102a   :  { %v1403_v0 = vadd.f32 %v1666_v37, %v1396_v38 }
0x102c   :  { %v1407_v39 = vsel %vm116_vm0, %v1403_v0, 0.0 }
0x102d   :  { %1408 = vadd.xlane.f32.xlu0 %v1407_v39 }
0x102f   :  { %v1393_v60 = vpop.f32.mrf.mxu0 }
0x1030   :  { %v1397_v4 = vadd.f32 %v1393_v60, %v2206_v16 }
0x1032   :  { %v1404_v40 = vadd.f32 %v1666_v37, %v1397_v4 }
0x1034   :  { %v1410_v41 = vsel %vm116_vm0, %v1404_v40, 0.0 }
0x1035   :  { %1411 = vadd.xlane.f32.xlu1 %v1410_v41 }
0x10a0   :  { %v1409_v42 = vpop.xlane.xlu0 %1408 }
0x10a1   :  { %v1413_v43 = vmul.f32 %v1409_v42, %v1972_v10 }
0x10a3   :  { %v1415_v2 = vsub.f32 %v1403_v0, %v1413_v43 }
0x10a5   :  { %v1417_v19 = vmul.f32 %v1415_v2, %v1415_v2 }
0x10a7   :  { %v1419_v44 = vsel %vm116_vm0, %v1417_v19, 0.0 }
0x10a8   :  { %1420 = vadd.xlane.f32.xlu0 %v1419_v44  ;;  %v1412_v12 = vpop.xlane.xlu1 %1411 }
0x10a9   :  { %v1414_v45 = vmul.f32 %v1412_v12, %v1972_v10 }
0x10ab   :  { %v1416_v46 = vsub.f32 %v1404_v40, %v1414_v45 }
0x10ad   :  { %v1418_v47 = vmul.f32 %v1416_v46, %v1416_v46 }
0x10af   :  { %v1422_v48 = vsel %vm116_vm0, %v1418_v47, 0.0 }
0x10b0   :  { %1423 = vadd.xlane.f32.xlu0 %v1422_v48 }
0x111b   :  { %v1421_v16 = vpop.xlane.xlu0 %1420 }
0x111c   :  { %v1425_v27 = vmul.f32 %v1421_v16, %v1972_v10 }
0x111e   :  { %v1427_v49 = vadd.f32 1e-05, %v1425_v27 }
0x1120   :  { %1727 = vrsqrt.f32 %v1427_v49  ;;  %vm1435_vm8 = vweird.f32 %v1427_v49 }
0x1123   :  { %v1424_v50 = vpop.xlane.xlu0 %1423 }
0x1124   :  { %v1426_v17 = vmul.f32 %v1424_v50, %v1972_v10 }
0x1126   :  { %v1728_v23 = vpop.eup %1727  ;;  %v1428_v29 = vadd.f32 1e-05, %v1426_v17 }
0x1127   :  { %v1430_v52 = vmul.f32 %v1728_v23, %v1427_v49  ;;  %vm1436_vm13 = vweird.f32 %v1728_v23 }
0x1128   :  { %1729 = vrsqrt.f32 %v1428_v29  ;;  %vm1437_vm9 = vmor %vm1435_vm8, %vm1436_vm13  ;;  %vm1445_vm5 = vweird.f32 %v1428_v29 }
0x1129   :  { %v1431_v54 = vmul.f32 %v1728_v23, %v1430_v52 }
0x112b   :  { %v1432_v55 = vmul.f32 0.5, %v1431_v54 }
0x112d   :  { %v1433_v56 = vsub.f32 1.5, %v1432_v55 }
0x112e   :  { %v1730_v30 = vpop.eup %1729 }
0x112f   :  { %v1434_v57 = vmul.f32 %v1728_v23, %v1433_v56  ;;  %v1440_v58 = vmul.f32 %v1730_v30, %v1428_v29  ;;  %vm1446_vm10 = vweird.f32 %v1730_v30 }
0x1130   :  { %vm1447_vm6 = vmor %vm1445_vm5, %vm1446_vm10 }
0x1131   :  { %v1438_v35 = vsel %vm1437_vm9, %v1728_v23, %v1434_v57  ;;  %v1441_v1 = vmul.f32 %v1730_v30, %v1440_v58 }
0x1132   :  { %v1449_v10 = vmul.f32 %v1438_v35, %v1415_v2 }
0x1133   :  { %v1442_v5 = vmul.f32 0.5, %v1441_v1 }
0x1134   :  { %v1454_v6 = vmul.f32 %v1667_v59, %v1449_v10 }
0x1135   :  { %v1443_v7 = vsub.f32 1.5, %v1442_v5 }
0x1136   :  { %v1459_v9 = vadd.f32 %v1668_v3, %v1454_v6 }
0x1137   :  { %v1444_v61 = vmul.f32 %v1730_v30, %v1443_v7 }
0x1138   :  { %1461 = vst.msk [vmem:[#allocation10] sm:$0xff] %vm116_vm0, %v1459_v9 }
0x1139   :  { %v1448_v13 = vsel %vm1447_vm6, %v1730_v30, %v1444_v61 }
0x113a   :  { %v1450_v14 = vmul.f32 %v1448_v13, %v1416_v46 }
0x113c   :  { %v1455_v63 = vmul.f32 %v1667_v59, %v1450_v14 }
0x113e   :  { %v1460_v15 = vadd.f32 %v1668_v3, %v1455_v63 }
0x1140   :  { %1462 = vst.msk [vmem:[#allocation10 + $0x8] sm:$0xff] %vm116_vm0, %v1460_v15 }
0x1141   :  { %1475 = dma.vmem_to_hbm [thread:$0]  %s1468_s22, 256, %s1470_s1, [#allocation4], %s1863_s25, %s1863_s25, %s1864_s26  }
0x1142   :  { %1857 = dma.done.wait [#allocation4], 256  }
0x1143   :  { %1858 = vsyncadd [#allocation4], 4294967040 }
0x1144   :  { %1480 = vsyncpa [#allocation3], 1 }
0x1145   :  { %1481 = vsyncpa [#allocation6], 1 }
0x1146   :  { %1482 = vsyncpa [#allocation9], 1 }
0x1147   :  { %1483 = vsyncpa [#allocation4], 1 }

</bundles_post_ra>
